<compile_context>
chip_gen: v7x
topology: tpu7x:2x2x1
jax: 0.10.0
libtpu: 0.0.40
codegen_flags: <defaults>
</compile_context>

<pallas_src>
import jax
import jax.numpy as jnp
from jax.experimental import pallas as pl
from jax.experimental.pallas import tpu as pltpu


def _round_up(x: int, m: int) -> int:
  return ((x + m - 1) // m) * m


def _head3_kernel(x_ref, w1_ref, b1_ref, w2_ref, b2_ref, w3_ref, b3_ref,
                  o_ref):
  """Fused 3-layer MLP on one (TM, in_dim) batch tile: (Lin+ReLU)x2 + Lin."""
  h = jnp.dot(x_ref[...], w1_ref[...], preferred_element_type=jnp.float32)
  h = jnp.maximum(h + b1_ref[...], 0.0)
  h = jnp.dot(h.astype(w2_ref.dtype), w2_ref[...],
              preferred_element_type=jnp.float32)
  h = jnp.maximum(h + b2_ref[...], 0.0)
  h = jnp.dot(h.astype(w3_ref.dtype), w3_ref[...],
              preferred_element_type=jnp.float32)
  o_ref[...] = (h + b3_ref[...]).astype(o_ref.dtype)


def _head2_kernel(x_ref, w1_ref, b1_ref, w3_ref, b3_ref, o_ref):
  """Fused 2-layer path (set_layers(2)): layer1 -> layer3, no identity pass."""
  h = jnp.dot(x_ref[...], w1_ref[...], preferred_element_type=jnp.float32)
  h = jnp.maximum(h + b1_ref[...], 0.0)
  h = jnp.dot(h.astype(w3_ref.dtype), w3_ref[...],
              preferred_element_type=jnp.float32)
  o_ref[...] = (h + b3_ref[...]).astype(o_ref.dtype)


def simsiam_projection_head(x, w1, b1, w2, b2, w3, b3, *, num_layers=3,
                            block_m=256, weight_dtype=None):
  """SimSiam projection head forward pass.

  Args:
    x:  (B, in_dim) activations.
    w1: (in_dim, hidden), b1: (1, hidden)
    w2: (hidden, hidden), b2: (1, hidden)
    w3: (hidden, out),    b3: (1, out)
    num_layers: 3 (layer1->layer2->layer3) or 2 (layer1->layer3), matching
      SimSiamProjectionHead.set_layers().
    block_m: batch tile; 256 fills the v6e/v7x MXU, 128 is plenty on v5e.
    weight_dtype: optional cast for the weight matrices (e.g. jnp.bfloat16 on
      v7x to halve weight VMEM/DMA); accumulation stays f32.
  """
  if num_layers not in (2, 3):
    raise ValueError(f"num_layers {num_layers} is not supported")

  B, in_dim = x.shape
  hidden = w1.shape[1]
  out_dim = w3.shape[1]

  if weight_dtype is not None:
    w1, w2, w3 = (w.astype(weight_dtype) for w in (w1, w2, w3))

  # Batch tile: sublane-aligned (multiple of 8), capped at block_m; pad B up
  # to a whole number of tiles so every grid step sees a full block.
  tm = min(block_m, _round_up(B, 8))
  b_pad = _round_up(B, tm)
  if b_pad != B:
    x = jnp.pad(x, ((0, b_pad - B), (0, 0)))
  grid = (b_pad // tm,)

  # x / out are tiled along the batch; weights & biases use a constant
  # index_map -> copied into VMEM once and kept resident across grid steps.
  x_spec = pl.BlockSpec((tm, in_dim), lambda i: (i, 0))
  out_spec = pl.BlockSpec((tm, out_dim), lambda i: (i, 0))

  def resident(a):
    return pl.BlockSpec(a.shape, lambda i, _nd=a.ndim: (0,) * _nd)

  if num_layers == 3:
    kernel = _head3_kernel
    params = (w1, b1, w2, b2, w3, b3)
    flops = 2 * b_pad * (in_dim * hidden + hidden * hidden + hidden * out_dim)
    weight_elems = in_dim * hidden + hidden * hidden + hidden * out_dim
    bias_elems = 2 * hidden + out_dim
  else:
    kernel = _head2_kernel
    params = (w1, b1, w3, b3)
    flops = 2 * b_pad * (in_dim * hidden + hidden * out_dim)
    weight_elems = in_dim * hidden + hidden * out_dim
    bias_elems = hidden + out_dim

  w_bytes = jnp.dtype(w1.dtype).itemsize
  x_bytes = jnp.dtype(x.dtype).itemsize
  weight_bytes = weight_elems * w_bytes + bias_elems * jnp.dtype(b1.dtype).itemsize
  io_bytes = (b_pad * in_dim + b_pad * out_dim) * x_bytes
  cost = pl.CostEstimate(flops=int(flops), transcendentals=0,
                         bytes_accessed=int(weight_bytes + io_bytes))

  # VMEM budget: resident weights + double-buffered x/out tiles + f32
  # intermediate activations, with 2x headroom (capped below physical VMEM).
  vmem_bytes = (weight_bytes
                + 2 * (tm * in_dim + tm * out_dim) * x_bytes
                + 2 * tm * max(hidden, out_dim) * 4)
  vmem_limit = int(min(max(2 * vmem_bytes, 8 << 20), 100 << 20))

  out = pl.pallas_call(
      kernel,
      out_shape=jax.ShapeDtypeStruct((b_pad, out_dim), x.dtype),
      grid=grid,
      in_specs=[x_spec] + [resident(p) for p in params],
      out_specs=out_spec,
      compiler_params=pltpu.CompilerParams(
          dimension_semantics=("parallel",),
          vmem_limit_bytes=vmem_limit),
      cost_estimate=cost,
  )(x, *params)

  return out[:B] if b_pad != B else out


def _reference3(x, w1, b1, w2, b2, w3, b3):
  h = jnp.maximum(x @ w1 + b1, 0.0)
  h = jnp.maximum(h @ w2 + b2, 0.0)
  return h @ w3 + b3


def _reference2(x, w1, b1, w3, b3):
  h = jnp.maximum(x @ w1 + b1, 0.0)
  return h @ w3 + b3


if __name__ == "__main__":
  # Module defaults (in_dim=768, hidden=256, out=256 -> lane-dense 128-multiple
  # feature dims) with a small batch that exercises padding (40 -> 48) and a
  # multi-step pipelined grid when block_m=16.
  B, IN_DIM, HIDDEN, OUT_DIM = 40, 768, 256, 256

  key = jax.random.PRNGKey(0)
  kx, k1, kb1, k2, kb2, k3, kb3 = jax.random.split(key, 7)

  x = jax.random.normal(kx, (B, IN_DIM), jnp.float32)
  w1 = jax.random.normal(k1, (IN_DIM, HIDDEN), jnp.float32) * (IN_DIM ** -0.5)
  b1 = jax.random.normal(kb1, (1, HIDDEN), jnp.float32) * 0.01
  w2 = jax.random.normal(k2, (HIDDEN, HIDDEN), jnp.float32) * (HIDDEN ** -0.5)
  b2 = jax.random.normal(kb2, (1, HIDDEN), jnp.float32) * 0.01
  w3 = jax.random.normal(k3, (HIDDEN, OUT_DIM), jnp.float32) * (HIDDEN ** -0.5)
  b3 = jax.random.normal(kb3, (1, OUT_DIM), jnp.float32) * 0.01

  ref3 = _reference3(x, w1, b1, w2, b2, w3, b3)
  ref2 = _reference2(x, w1, b1, w3, b3)

  # 3-layer path, small batch tile -> padding + 3 pipelined grid steps.
  out3 = jax.block_until_ready(
      simsiam_projection_head(x, w1, b1, w2, b2, w3, b3, num_layers=3,
                              block_m=16))
  assert out3.shape == (B, OUT_DIM)
  assert jnp.allclose(out3, ref3, atol=2e-3, rtol=2e-3)

  # 2-layer path (set_layers(2)) -> dedicated kernel body, no identity matmul.
  out2 = jax.block_until_ready(
      simsiam_projection_head(x, w1, b1, w2, b2, w3, b3, num_layers=2,
                              block_m=16))
  assert out2.shape == (B, OUT_DIM)
  assert jnp.allclose(out2, ref2, atol=2e-3, rtol=2e-3)

  # Default production tile size (single tile here since B is tiny).
  out3b = jax.block_until_ready(
      simsiam_projection_head(x, w1, b1, w2, b2, w3, b3, num_layers=3))
  assert jnp.allclose(out3b, ref3, atol=2e-3, rtol=2e-3)

  print("KERNEL_OK")
</pallas_src>

<mosaic_0001>
module attributes {stable_mosaic.version = 11 : i64} {
  func.func @_head3_kernel(%arg0: i32, %arg1: memref<16x768xf32, #tpu.memory_space<vmem>>, %arg2: memref<768x256xf32, #tpu.memory_space<vmem>>, %arg3: memref<1x256xf32, #tpu.memory_space<vmem>>, %arg4: memref<256x256xf32, #tpu.memory_space<vmem>>, %arg5: memref<1x256xf32, #tpu.memory_space<vmem>>, %arg6: memref<256x256xf32, #tpu.memory_space<vmem>>, %arg7: memref<1x256xf32, #tpu.memory_space<vmem>>, %arg8: memref<16x256xf32, #tpu.memory_space<vmem>>) attributes {dimension_semantics = [#tpu.dimension_semantics<parallel>], iteration_bounds = array<i64: 3>, scalar_prefetch = 0 : i64, scratch_operands = 0 : i64, tpu.core_type = #tpu.core_type<tc>, window_params = [{transform_indices = @transform_0, window_bounds = array<i64: 16, 768>}, {pipeline_mode = #tpu.pipeline_mode<synchronous>, transform_indices = @transform_1, window_bounds = array<i64: 768, 256>}, {pipeline_mode = #tpu.pipeline_mode<synchronous>, transform_indices = @transform_2, window_bounds = array<i64: 1, 256>}, {pipeline_mode = #tpu.pipeline_mode<synchronous>, transform_indices = @transform_3, window_bounds = array<i64: 256, 256>}, {pipeline_mode = #tpu.pipeline_mode<synchronous>, transform_indices = @transform_4, window_bounds = array<i64: 1, 256>}, {pipeline_mode = #tpu.pipeline_mode<synchronous>, transform_indices = @transform_5, window_bounds = array<i64: 256, 256>}, {pipeline_mode = #tpu.pipeline_mode<synchronous>, transform_indices = @transform_6, window_bounds = array<i64: 1, 256>}, {transform_indices = @transform_7, window_bounds = array<i64: 16, 256>}]} {
    %c0 = arith.constant 0 : index
    %c0_0 = arith.constant 0 : index
    %0 = vector.load %arg1[%c0, %c0_0] : memref<16x768xf32, #tpu.memory_space<vmem>>, vector<16x768xf32>
    %c0_1 = arith.constant 0 : index
    %c0_2 = arith.constant 0 : index
    %1 = vector.load %arg2[%c0_1, %c0_2] : memref<768x256xf32, #tpu.memory_space<vmem>>, vector<768x256xf32>
    %cst = arith.constant dense<0.000000e+00> : vector<16x256xf32>
    %2 = tpu.matmul %0, %1, %cst {dimension_numbers = #tpu.dot_dimension_numbers<[1], [0], [0], [1], [0, 0, 1, 1], [], []>} : vector<16x768xf32>, vector<768x256xf32>, vector<16x256xf32> -> vector<16x256xf32>
    %c0_3 = arith.constant 0 : index
    %c0_4 = arith.constant 0 : index
    %3 = vector.load %arg3[%c0_3, %c0_4] : memref<1x256xf32, #tpu.memory_space<vmem>>, vector<1x256xf32>
    %4 = vector.broadcast %3 : vector<1x256xf32> to vector<16x256xf32>
    %5 = arith.addf %2, %4 : vector<16x256xf32>
    %cst_5 = arith.constant 0.000000e+00 : f32
    %6 = vector.broadcast %cst_5 : f32 to vector<16x256xf32>
    %7 = arith.maximumf %5, %6 : vector<16x256xf32>
    %c0_6 = arith.constant 0 : index
    %c0_7 = arith.constant 0 : index
    %8 = vector.load %arg4[%c0_6, %c0_7] : memref<256x256xf32, #tpu.memory_space<vmem>>, vector<256x256xf32>
    %cst_8 = arith.constant dense<0.000000e+00> : vector<16x256xf32>
    %9 = tpu.matmul %7, %8, %cst_8 {dimension_numbers = #tpu.dot_dimension_numbers<[1], [0], [0], [1], [0, 0, 1, 1], [], []>} : vector<16x256xf32>, vector<256x256xf32>, vector<16x256xf32> -> vector<16x256xf32>
    %c0_9 = arith.constant 0 : index
    %c0_10 = arith.constant 0 : index
    %10 = vector.load %arg5[%c0_9, %c0_10] : memref<1x256xf32, #tpu.memory_space<vmem>>, vector<1x256xf32>
    %11 = vector.broadcast %10 : vector<1x256xf32> to vector<16x256xf32>
    %12 = arith.addf %9, %11 : vector<16x256xf32>
    %cst_11 = arith.constant 0.000000e+00 : f32
    %13 = vector.broadcast %cst_11 : f32 to vector<16x256xf32>
    %14 = arith.maximumf %12, %13 : vector<16x256xf32>
    %c0_12 = arith.constant 0 : index
    %c0_13 = arith.constant 0 : index
    %15 = vector.load %arg6[%c0_12, %c0_13] : memref<256x256xf32, #tpu.memory_space<vmem>>, vector<256x256xf32>
    %cst_14 = arith.constant dense<0.000000e+00> : vector<16x256xf32>
    %16 = tpu.matmul %14, %15, %cst_14 {dimension_numbers = #tpu.dot_dimension_numbers<[1], [0], [0], [1], [0, 0, 1, 1], [], []>} : vector<16x256xf32>, vector<256x256xf32>, vector<16x256xf32> -> vector<16x256xf32>
    %c0_15 = arith.constant 0 : index
    %c0_16 = arith.constant 0 : index
    %17 = vector.load %arg7[%c0_15, %c0_16] : memref<1x256xf32, #tpu.memory_space<vmem>>, vector<1x256xf32>
    %18 = vector.broadcast %17 : vector<1x256xf32> to vector<16x256xf32>
    %19 = arith.addf %16, %18 : vector<16x256xf32>
    %c0_17 = arith.constant 0 : index
    %c0_18 = arith.constant 0 : index
    %20 = vector.load %arg8[%c0_17, %c0_18] : memref<16x256xf32, #tpu.memory_space<vmem>>, vector<16x256xf32>
    tpu.vector_store %arg8[%c0_17, %c0_18], %19 {strides = array<i32>} : memref<16x256xf32, #tpu.memory_space<vmem>>, vector<16x256xf32>,
    return
  }
  func.func @transform_0(%arg0: i32) -> (i32, i32) {
    %c0_i32 = arith.constant 0 : i32
    %c0_i32_0 = arith.constant 0 : i32
    return %arg0, %c0_i32 : i32, i32
  }
  func.func @transform_1(%arg0: i32) -> (i32, i32) {
    %c0_i32 = arith.constant 0 : i32
    %c0_i32_0 = arith.constant 0 : i32
    %c0_i32_1 = arith.constant 0 : i32
    return %c0_i32, %c0_i32_0 : i32, i32
  }
  func.func @transform_2(%arg0: i32) -> (i32, i32) {
    %c0_i32 = arith.constant 0 : i32
    %c0_i32_0 = arith.constant 0 : i32
    %c0_i32_1 = arith.constant 0 : i32
    return %c0_i32, %c0_i32_0 : i32, i32
  }
  func.func @transform_3(%arg0: i32) -> (i32, i32) {
    %c0_i32 = arith.constant 0 : i32
    %c0_i32_0 = arith.constant 0 : i32
    %c0_i32_1 = arith.constant 0 : i32
    return %c0_i32, %c0_i32_0 : i32, i32
  }
  func.func @transform_4(%arg0: i32) -> (i32, i32) {
    %c0_i32 = arith.constant 0 : i32
    %c0_i32_0 = arith.constant 0 : i32
    %c0_i32_1 = arith.constant 0 : i32
    return %c0_i32, %c0_i32_0 : i32, i32
  }
  func.func @transform_5(%arg0: i32) -> (i32, i32) {
    %c0_i32 = arith.constant 0 : i32
    %c0_i32_0 = arith.constant 0 : i32
    %c0_i32_1 = arith.constant 0 : i32
    return %c0_i32, %c0_i32_0 : i32, i32
  }
  func.func @transform_6(%arg0: i32) -> (i32, i32) {
    %c0_i32 = arith.constant 0 : i32
    %c0_i32_0 = arith.constant 0 : i32
    %c0_i32_1 = arith.constant 0 : i32
    return %c0_i32, %c0_i32_0 : i32, i32
  }
  func.func @transform_7(%arg0: i32) -> (i32, i32) {
    %c0_i32 = arith.constant 0 : i32
    %c0_i32_0 = arith.constant 0 : i32
    return %arg0, %c0_i32 : i32, i32
  }
}

</mosaic_0001>

<bundles_post_ra>
// kernel: tpu_custom_call.1
= control target key start
LH: loop header
LB: loop body
LE: loop exit
PB: predicated region body
PF: predicated region fallthrough
CT: control target
= control target key end

     0   :  { %12 = vsyncpa [#allocation3], 0  ;;  %s2207_s0 = inlined_call_operand.hbm [shape: f32[48,768], index: 0, kind: input, shape index: {}]   ;;  %s2208_s1 = inlined_call_operand.hbm [shape: f32[768,256], index: 1, kind: input, shape index: {}]   ;;  %s2209_s2 = inlined_call_operand.vmem [shape: f32[1,256], index: 2, kind: input, shape index: {}]   ;;  %s2210_s3 = inlined_call_operand.hbm [shape: f32[256,256], index: 3, kind: input, shape index: {}]   ;;  %s2211_s4 = inlined_call_operand.vmem [shape: f32[1,256], index: 4, kind: input, shape index: {}]   ;;  %s2212_s5 = inlined_call_operand.hbm [shape: f32[256,256], index: 5, kind: input, shape index: {}]   ;;  %s2213_s6 = inlined_call_operand.vmem [shape: f32[1,256], index: 6, kind: input, shape index: {}]   ;;  %s2214_s7 = inlined_call_operand.hbm [shape: f32[48,256], index: 7, kind: output, shape index: {}]  }
   0x1   :  { %14 = vsyncpa [#allocation3 + $0x1], 0 }
   0x2   :  { %15 = vsyncpa [#allocation6], 0 }
   0x3   :  { %16 = vsyncpa [#allocation9], 0 }
   0x4   :  { %17 = vsyncpa [#allocation4], 0 }
   0x5   :  { %19 = vsyncpa [#allocation4 + $0x1], 0  ;;  %s1907_s24 = smov 0   ;;  %s1909_s25 = smov 0  }
   0x6   :  { %s1911_s26 = smov 0   ;;  %s1913_s27 = smov 0  }
   0x7 LB: > { %s1928_s28 = sadd.s32 4294967295, %s1854_s27   ;;  %s1226_s29 = sadd.s32 4294967294, %s1854_s27   ;;  %s1854_s27 = sphi %s1913_s27, %s2239_s27   ;;  %s1850_s26 = sphi %s1911_s26, %s2238_s26   ;;  %s1846_s25 = sphi %s1909_s25, %s2237_s25   ;;  %s1842_s24 = sphi %s1907_s24, %s2236_s24  }
   0x8   : > { %p45_p0 = scmp.ne.s32.totalorder %s1846_s25, %s1842_s24  ;;  %p2215_p1 = scmp.eq.s32.totalorder %s1928_s28, 0 }
   0x9   : > { %p201_p3 = scmp.eq.s32.totalorder %s1226_s29, 2  ;;  %p1227_p5 = scmp.ge.s32.totalorder %s1854_s27, 1 }
   0xa   : > { %p1937_p4 = por %p2215_p1, %p45_p0  ;;  %p208_p7 = scmp.lt.s32.totalorder %s1854_s27, 4 }
   0xb   : > { %p1942_p6 = por %p201_p3, %p45_p0  ;;  %s1856_s10 = smov [#allocation5]  }
   0xc   : > { %s2219_s30 = scalar_select %p1937_p4, 1, 0 }
   0xd   : > { %s2220_s8 = scalar_select %p1942_p6, 1, 0 }
   0xe   : > { %p1947_p8 = pnand %p1227_p5, %p208_p7  ;;  %s220_s11 = sshll.u32 %s1856_s10, 4  ;;  %s1951_s11 = int_to_ptr.vmem [resolvable:$true] %s220_s11 }
   0xf   : > { %2221 = sst [smem:[#allocation15_spill]] %s2220_s8  ;;  %s1857_s13 = smov [#allocation7]  }
  0x10   : > { %s2222_s9 = scalar_select %p1947_p8, 1, 0 }
  0x11   : > { %p1599_p9 = pneg %p1947_p8  ;;  %s236_s14 = sshll.u32 %s1857_s13, 4  ;;  %s1961_s14 = int_to_ptr.vmem [resolvable:$true] %s236_s14 }
  0x12   : > { %s1858_s15 = smov [#allocation8]   ;;  %s1666_s19 = scalar_lea.hbm %s2208_s1, 24576 }
  0x13   : > { %p1957_p10 = pnand %p1599_p9, %p2215_p1  ;;  %s1963_s16 = sshll.u32 %s1858_s15, 4  ;;  %s253_s16 = int_to_ptr.vmem [resolvable:$true] %s1963_s16 }
  0x14   : > { %p1667_p11 = scmp.ne.s32.totalorder %s2208_s1, %s1666_s19  ;;  %p1673_p3 = scmp.lt.u32.totalorder %s1666_s19, %s2208_s1 }
  0x15   : > { %p1973_p12 = pneg %p1957_p10 }
  0x17   : > { %p1669_p13 = pnand %p1973_p12, %p1667_p11 }
  0x19   : > { %p1670_p0 = pneg %p1669_p13 }
  0x1b   : > { %p1675_p5 = pnand %p1673_p3, %p1670_p0 }
  0x1d   : > { %1678 = shalt.err (!%p1675_p5)
}
  0x1e   : > { %s1679_s10 = scalar_lea.vmem %s1951_s11, 24576  ;;  %p1687_p2 = scmp.lt.s32.totalorder %s1951_s11, %s1951_s11 }
  0x1f   : > { %p1680_p7 = scmp.ne.s32.totalorder %s1951_s11, %s1679_s10  ;;  %p1688_p6 = scmp.lt.s32.totalorder %s1679_s10, %s1679_s10 }
  0x21   : > { %p1682_p9 = pnand %p1680_p7, %p1973_p12  ;;  %p1689_p11 = por %p1688_p6, %p1687_p2 }
  0x23   : > { %p1683_p1 = pneg %p1682_p9 }
  0x25   : > { %p1690_p13 = pnand %p1689_p11, %p1683_p1 }
  0x27   : > { %1693 = shalt.err (!%p1690_p13)
}
  0x28   : > { %s1859_s13 = smov 256   ;;  %s1860_s15 = smov 16  }
  0x29   : > { %1602 = dma.hbm_to_vmem [thread:$0]  (!%p1957_p10), %s2208_s1, 24576, %s1951_s11, [#allocation6], %s1859_s13, %s1859_s13, %s1860_s15  }
  0x2a   : > { %s1694_s21 = scalar_lea.hbm %s2210_s3, 8192 }
  0x2b   : > { %p1695_p1 = scmp.ne.s32.totalorder %s2210_s3, %s1694_s21  ;;  %p1701_p0 = scmp.lt.u32.totalorder %s1694_s21, %s2210_s3 }
  0x2d   : > { %p1697_p2 = pnand %p1695_p1, %p1973_p12 }
  0x2f   : > { %p1698_p6 = pneg %p1697_p2 }
  0x31   : > { %p1703_p3 = pnand %p1701_p0, %p1698_p6 }
  0x33   : > { %1706 = shalt.err (!%p1703_p3)
}
  0x34   : > { %s1707_s11 = scalar_lea.vmem %s1961_s14, 8192  ;;  %p1715_p11 = scmp.lt.s32.totalorder %s1961_s14, %s1961_s14 }
  0x35   : > { %p1708_p5 = scmp.ne.s32.totalorder %s1961_s14, %s1707_s11  ;;  %p1716_p13 = scmp.lt.s32.totalorder %s1707_s11, %s1707_s11 }
  0x37   : > { %p1710_p7 = pnand %p1708_p5, %p1973_p12  ;;  %p1717_p1 = por %p1716_p13, %p1715_p11 }
  0x39   : > { %p1711_p9 = pneg %p1710_p7 }
  0x3b   : > { %p1718_p2 = pnand %p1717_p1, %p1711_p9 }
  0x3d   : > { %1721 = shalt.err (!%p1718_p2)
}
  0x3e   : > { %1605 = dma.hbm_to_vmem [thread:$0]  (!%p1957_p10), %s2210_s3, 8192, %s1961_s14, [#allocation6], %s1859_s13, %s1859_s13, %s1860_s15  }
  0x3f   : > { %s1722_s20 = scalar_lea.hbm %s2212_s5, 8192 }
  0x40   : > { %p1723_p6 = scmp.ne.s32.totalorder %s2212_s5, %s1722_s20  ;;  %p1729_p5 = scmp.lt.u32.totalorder %s1722_s20, %s2212_s5 }
  0x42   : > { %p1725_p0 = pnand %p1723_p6, %p1973_p12 }
  0x44   : > { %p1726_p3 = pneg %p1725_p0 }
  0x46   : > { %p1731_p7 = pnand %p1729_p5, %p1726_p3 }
  0x48   : > { %1734 = shalt.err (!%p1731_p7)
}
  0x49   : > { %s1735_s11 = scalar_lea.vmem %s253_s16, 8192  ;;  %p1743_p1 = scmp.lt.s32.totalorder %s253_s16, %s253_s16 }
  0x4a   : > { %p1736_p9 = scmp.ne.s32.totalorder %s253_s16, %s1735_s11  ;;  %p1744_p2 = scmp.lt.s32.totalorder %s1735_s11, %s1735_s11 }
  0x4c   : > { %p1738_p11 = pnand %p1736_p9, %p1973_p12  ;;  %p1745_p4 = por %p1744_p2, %p1743_p1 }
  0x4e   : > { %p1739_p13 = pneg %p1738_p11 }
  0x50   : > { %p1746_p8 = pnand %p1745_p4, %p1739_p13 }
  0x52   : > { %1749 = shalt.err (!%p1746_p8)
}
  0x53   : > { %1608 = dma.hbm_to_vmem [thread:$0]  (!%p1957_p10), %s2212_s5, 8192, %s253_s16, [#allocation9], %s1859_s13, %s1859_s13, %s1860_s15  }
  0x54   : > { %s2046_s22 = sadd.s32 1, %s1854_s27   ;;  %s32_s17 = sadd.s32 1, %s1850_s26 }
  0x55   : > { %s29_s12 = ssub.s32 %s1854_s27, %s2046_s22  ;;  %p39_p8 = scmp.ne.s32.totalorder %s1850_s26, %s1846_s25 }
  0x56   : > { %p30_p4 = scmp.eq.s32.totalorder %s29_s12, 0  ;;  %p40_p12 = scmp.eq.s32.totalorder %s1854_s27, 0 }
  0x57   : > { %p1620_p6 = scmp.lt.s32.totalorder %s1854_s27, 3  ;;  %p2225_p3 = scmp.eq.s32.totalorder %s1928_s28, 2 }
  0x58   : > { %s2056_s18 = scalar_select %p30_p4, %s1850_s26, %s32_s17  }
  0x59   : > { %p41_p0 = por %p40_p12, %p39_p8  ;;  %p2060_p5 = por %p2225_p3, %p39_p8 }
  0x5a   : > { %s269_s20 = sand.u32 1, %s1850_s26   ;;  %s1581_s21 = smul.u32 1536, %s1854_s27 }
  0x5b   : > { %s1580_s16 = smul.u32 96, %s269_s20  ;;  %p2071_p10 = pnand %p1620_p6, %p41_p0 }
  0x5c   : > { %s2069_s23 = scalar_lea.hbm %s2207_s0, %s1581_s21  ;;  %s2077_s14 = scalar_lea.sflag [#allocation3], %s269_s20 }
  0x5d   : > { %s273_s10 = scalar_lea.vmem [#allocation2], %s1580_s16  ;;  %s1750_s8 = scalar_lea.hbm %s2069_s23, 1536 }
  0x5e   : > { %s281_s11 = sshll.u32 %s273_s10, 4  ;;  %p1751_p7 = scmp.ne.s32.totalorder %s2069_s23, %s1750_s8  ;;  %s2075_s11 = int_to_ptr.vmem [resolvable:$true] %s281_s11 }
  0x5f   : > { %p1752_p9 = pneg %p2071_p10  ;;  %s1755_s21 = scalar_lea.hbm %s2207_s0, 4608 }
  0x60   : > { %p1756_p1 = scmp.lt.u32.totalorder %s2069_s23, %s2207_s0  ;;  %p1757_p2 = scmp.lt.u32.totalorder %s1755_s21, %s1750_s8 }
  0x61   : > { %p1753_p11 = pnand %p1752_p9, %p1751_p7  ;;  %p1759_p8 = scmp.lt.u32.totalorder %s1750_s8, %s2069_s23 }
  0x62   : > { %p1758_p4 = por %p1757_p2, %p1756_p1 }
  0x63   : > { %p1754_p13 = pneg %p1753_p11 }
  0x64   : > { %p1760_p12 = por %p1759_p8, %p1758_p4 }
  0x66   : > { %p1761_p6 = pnand %p1760_p12, %p1754_p13 }
  0x68   : > { %1764 = shalt.err (!%p1761_p6)
}
  0x69   : > { %s1765_s20 = scalar_lea.vmem %s2075_s11, 1536  ;;  %s1861_s16 = smov [#allocation2]  }
  0x6a   : > { %p1766_p0 = scmp.ne.s32.totalorder %s2075_s11, %s1765_s20  ;;  %s1770_s10 = sshll.u32 %s1861_s16, 4  ;;  %s1771_s10 = int_to_ptr.vmem [resolvable:$false] %s1770_s10 }
  0x6b   : > { %s1772_s12 = scalar_lea.vmem %s1771_s10, 3072  ;;  %p1773_p11 = scmp.lt.s32.totalorder %s2075_s11, %s1771_s10 }
  0x6c   : > { %p1768_p3 = pnand %p1766_p0, %p1752_p9  ;;  %p1774_p1 = scmp.lt.s32.totalorder %s1772_s12, %s1765_s20 }
  0x6e   : > { %p1769_p7 = pneg %p1768_p3  ;;  %p1775_p2 = por %p1774_p1, %p1773_p11 }
  0x70   : > { %p1776_p4 = pnand %p1775_p2, %p1769_p7 }
  0x72   : > { %1779 = shalt.err (!%p1776_p4)
}
  0x73   : > { %s1862_s8 = smov 768   ;;  %s1863_s17 = smov 48  }
  0x74   : > { %1612 = dma.hbm_to_vmem [thread:$0]  (!%p2071_p10), %s2069_s23, 1536, %s2075_s11, %s2077_s14, %s1862_s8, %s1862_s8, %s1863_s17  }
  0x75   : > { %p2228_p9 = scmp.ne.s32.totalorder %s2222_s9, 0 }
  0x76   : > { %s2108_s21 = sand.u32 (!%p2228_p9), 1, %s1846_s25   ;;  %p2229_p13 = scmp.ne.s32.totalorder (!%p2228_p9), %s2219_s30, 0 }
  0x77   : > { %293 = sbr.rel (%p2228_p9) target bundleno = 999 (0x3e7), region = 48  ;;  %s296_s15 = scalar_lea.sflag (!%p2228_p9), [#allocation3], %s2108_s21 }
  0x78   : > { %s1582_s13 = smul.u32 (!%p2228_p9), 96, %s2108_s21 }
  0x7a   : > { %s2112_s20 = scalar_lea.vmem (!%p2228_p9), [#allocation2], %s1582_s13 }
  0x7e   : > { %1825 = dma.done.wait (%p2229_p13), %s296_s15, 1536  }
  0x7f   : > { %1827 = vsyncadd (%p2229_p13), %s296_s15, 4294965760  ;;  %p2230_p10 = scmp.eq.s32.totalorder %s1928_s28, 0 }
  0x81   : > { %1829 = dma.done.wait (%p2230_p10), [#allocation6], 32768   ;;  %p2231_p8 = pmov %p2230_p10 }
  0x83   : > { %1831 = vsyncadd (%p2231_p8), [#allocation6], 4294934528  ;;  %p2232_p12 = pmov %p2231_p8 }
  0x84   : > { %p2233_p6 = pmov %p2231_p8 }
  0x85   : > { %1833 = dma.done.wait (%p2232_p12), [#allocation9], 8192  }
  0x86   : > { %1835 = vsyncadd (%p2233_p6), [#allocation9], 4294959104  ;;  %v357_v0 = vld [vmem:[#allocation5 + $0x8] sm:$0xff]  ;;  %v359_v1 = vld [vmem:[#allocation5 + $0x18] sm:$0xff]  ;;  %s1239_s16 = sshll.u32 %s2108_s21, 5  ;;  %s1247_s8 = sshll.u32 %s1928_s28, 9 }
  0x87   : > { %v356_v2 = vld [vmem:[#allocation5] sm:$0xff]  ;;  %v1248_v3 = vpack.c.bf16 %v359_v1, %v357_v0  ;;  %v358_v4 = vld [vmem:[#allocation5 + $0x10] sm:$0xff]  ;;  %v361_v5 = vld [vmem:[#allocation5 + $0x28] sm:$0xff]  ;;  %s341_s10 = scalar_lea.vmem [#allocation10], %s1239_s16  ;;  %s2164_s15 = scalar_lea.hbm %s2214_s7, %s1247_s8 }
  0x88   : > { %v363_v6 = vld [vmem:[#allocation5 + $0x38] sm:$0xff]  ;;  %v1250_v7 = vpack.c.bf16 %v358_v4, %v356_v2  ;;  %v360_v9 = vld [vmem:[#allocation5 + $0x20] sm:$0xff]  ;;  %v362_v10 = vld [vmem:[#allocation5 + $0x30] sm:$0xff]  ;;  %s1124_s12 = sshll.u32 %s341_s10, 4  ;;  %s1864_s30 = smov [#allocation10]   ;;  %s2159_s12 = int_to_ptr.vmem [resolvable:$true] %s1124_s12 }
  0x89   : > { %v1252_v8 = vpack.c.bf16 %v363_v6, %v361_v5  ;;  %v365_v11 = vld [vmem:[#allocation5 + $0x48] sm:$0xff]  ;;  %1249 = vmatprep.subr.bf16.mxu0 %v1248_v3  ;;  %v367_v12 = vld [vmem:[#allocation5 + $0x58] sm:$0xff]  ;;  %v1254_v13 = vpack.c.bf16 %v362_v10, %v360_v9  ;;  %v364_v15 = vld [vmem:[#allocation5 + $0x40] sm:$0xff]  ;;  %s1780_s28 = scalar_lea.vmem %s2159_s12, 512  ;;  %s1784_s9 = sshll.u32 %s1864_s30, 4  ;;  %s1785_s9 = int_to_ptr.vmem [resolvable:$false] %s1784_s9 }
  0x8a   : > { %1251 = vmatpush1.bf16.msra.mxu0 %v1250_v7  ;;  %v1256_v14 = vpack.c.bf16 %v367_v12, %v365_v11  ;;  %v366_v16 = vld [vmem:[#allocation5 + $0x50] sm:$0xff]  ;;  %v369_v17 = vld [vmem:[#allocation5 + $0x68] sm:$0xff]  ;;  %v371_v18 = vld [vmem:[#allocation5 + $0x78] sm:$0xff]  ;;  %p1781_p0 = scmp.ne.s32.totalorder %s2159_s12, %s1780_s28  ;;  %s1786_s23 = scalar_lea.vmem %s1785_s9, 1024 }
  0x8b   : > { %1253 = vmatprep.subr.bf16.mxu0 %v1252_v8  ;;  %v1258_v19 = vpack.c.bf16 %v366_v16, %v364_v15  ;;  %v1260_v20 = vpack.c.bf16 %v371_v18, %v369_v17  ;;  %v368_v21 = vld [vmem:[#allocation5 + $0x60] sm:$0xff]  ;;  %v370_v22 = vld [vmem:[#allocation5 + $0x70] sm:$0xff]  ;;  %v373_v23 = vld [vmem:[#allocation5 + $0x88] sm:$0xff]  ;;  %p1787_p11 = scmp.lt.s32.totalorder %s2159_s12, %s1785_s9  ;;  %p1788_p1 = scmp.lt.s32.totalorder %s1786_s23, %s1780_s28 }
  0x8c   : > { %v375_v24 = vld [vmem:[#allocation5 + $0x98] sm:$0xff]  ;;  %v1262_v25 = vpack.c.bf16 %v370_v22, %v368_v21  ;;  %v372_v27 = vld [vmem:[#allocation5 + $0x80] sm:$0xff]  ;;  %v374_v28 = vld [vmem:[#allocation5 + $0x90] sm:$0xff]  ;;  %p1782_p3 = pnand %p1781_p0, %p2060_p5 }
  0x8d   : > { %v1264_v26 = vpack.c.bf16 %v375_v24, %v373_v23  ;;  %v377_v29 = vld [vmem:[#allocation5 + $0xa8] sm:$0xff]  ;;  %v379_v30 = vld [vmem:[#allocation5 + $0xb8] sm:$0xff]  ;;  %v1266_v31 = vpack.c.bf16 %v374_v28, %v372_v27  ;;  %v376_v33 = vld [vmem:[#allocation5 + $0xa0] sm:$0xff]  ;;  %p1789_p2 = por %p1788_p1, %p1787_p11 }
  0x8e   : > { %1255 = vmatpush1.bf16.msra.mxu0 %v1254_v13  ;;  %v1268_v32 = vpack.c.bf16 %v379_v30, %v377_v29  ;;  %v378_v34 = vld [vmem:[#allocation5 + $0xb0] sm:$0xff]  ;;  %v381_v35 = vld [vmem:[#allocation5 + $0xc8] sm:$0xff]  ;;  %v383_v36 = vld [vmem:[#allocation5 + $0xd8] sm:$0xff]  ;;  %p1783_p7 = pneg %p1782_p3 }
  0x8f   : > { %1257 = vmatprep.subr.bf16.mxu0 %v1256_v14  ;;  %v1270_v37 = vpack.c.bf16 %v378_v34, %v376_v33  ;;  %v1272_v38 = vpack.c.bf16 %v383_v36, %v381_v35  ;;  %v380_v39 = vld [vmem:[#allocation5 + $0xc0] sm:$0xff]  ;;  %v382_v40 = vld [vmem:[#allocation5 + $0xd0] sm:$0xff]  ;;  %v345_v41 = vld [vmem:[%s2112_s20 + $0x8] sm:$0xff] }
  0x90   : > { %v385_v42 = vld [vmem:[#allocation5 + $0xe8] sm:$0xff]  ;;  %v387_v43 = vld [vmem:[#allocation5 + $0xf8] sm:$0xff]  ;;  %624 = vmatprep.mubr.f32.mxu0 %v345_v41  ;;  %v1274_v44 = vpack.c.bf16 %v382_v40, %v380_v39  ;;  %v384_v46 = vld [vmem:[#allocation5 + $0xe0] sm:$0xff]  ;;  %p1790_p4 = pnand %p1789_p2, %p1783_p7 }
  0x91   : > { %v1276_v45 = vpack.c.bf16 %v387_v43, %v385_v42  ;;  %v386_v47 = vld [vmem:[#allocation5 + $0xf0] sm:$0xff]  ;;  %v389_v48 = vld [vmem:[#allocation5 + $0x108] sm:$0xff]  ;;  %v391_v49 = vld [vmem:[#allocation5 + $0x118] sm:$0xff] }
  0x92   : > { %1259 = vmatpush1.bf16.msra.mxu0 %v1258_v19  ;;  %v1278_v50 = vpack.c.bf16 %v386_v47, %v384_v46  ;;  %v1280_v51 = vpack.c.bf16 %v391_v49, %v389_v48  ;;  %v388_v52 = vld [vmem:[#allocation5 + $0x100] sm:$0xff]  ;;  %v390_v53 = vld [vmem:[#allocation5 + $0x110] sm:$0xff]  ;;  %v393_v54 = vld [vmem:[#allocation5 + $0x128] sm:$0xff] }
  0x93   : > { %1261 = vmatprep.subr.bf16.mxu0 %v1260_v20  ;;  %v395_v55 = vld [vmem:[#allocation5 + $0x138] sm:$0xff]  ;;  %v1282_v56 = vpack.c.bf16 %v390_v53, %v388_v52  ;;  %v392_v58 = vld [vmem:[#allocation5 + $0x120] sm:$0xff]  ;;  %v394_v59 = vld [vmem:[#allocation5 + $0x130] sm:$0xff] }
  0x94   : > { %v1284_v57 = vpack.c.bf16 %v395_v55, %v393_v54  ;;  %v397_v60 = vld [vmem:[#allocation5 + $0x148] sm:$0xff]  ;;  %v399_v61 = vld [vmem:[#allocation5 + $0x158] sm:$0xff]  ;;  %v1286_v62 = vpack.c.bf16 %v394_v59, %v392_v58  ;;  %v396_v0 = vld [vmem:[#allocation5 + $0x140] sm:$0xff] }
  0x95   : > { %v1288_v63 = vpack.c.bf16 %v399_v61, %v397_v60  ;;  %v398_v1 = vld [vmem:[#allocation5 + $0x150] sm:$0xff]  ;;  %v401_v2 = vld [vmem:[#allocation5 + $0x168] sm:$0xff]  ;;  %v403_v3 = vld [vmem:[#allocation5 + $0x178] sm:$0xff] }
  0x96   : > { %1263 = vmatpush1.bf16.msra.mxu0 %v1262_v25  ;;  %v1290_v4 = vpack.c.bf16 %v398_v1, %v396_v0  ;;  %v1292_v5 = vpack.c.bf16 %v403_v3, %v401_v2  ;;  %v400_v6 = vld [vmem:[#allocation5 + $0x160] sm:$0xff]  ;;  %v402_v7 = vld [vmem:[#allocation5 + $0x170] sm:$0xff]  ;;  %v405_v8 = vld [vmem:[#allocation5 + $0x188] sm:$0xff] }
  0x97   : > { %1265 = vmatprep.subr.bf16.mxu0 %v1264_v26  ;;  %v407_v9 = vld [vmem:[#allocation5 + $0x198] sm:$0xff]  ;;  %v1294_v10 = vpack.c.bf16 %v402_v7, %v400_v6  ;;  %v404_v12 = vld [vmem:[#allocation5 + $0x180] sm:$0xff]  ;;  %v406_v13 = vld [vmem:[#allocation5 + $0x190] sm:$0xff] }
  0x98   : > { %v1296_v11 = vpack.c.bf16 %v407_v9, %v405_v8  ;;  %v409_v14 = vld [vmem:[#allocation5 + $0x1a8] sm:$0xff]  ;;  %v411_v15 = vld [vmem:[#allocation5 + $0x1b8] sm:$0xff]  ;;  %v1298_v16 = vpack.c.bf16 %v406_v13, %v404_v12  ;;  %v408_v18 = vld [vmem:[#allocation5 + $0x1a0] sm:$0xff] }
  0x99   : > { %v1300_v17 = vpack.c.bf16 %v411_v15, %v409_v14  ;;  %v410_v19 = vld [vmem:[#allocation5 + $0x1b0] sm:$0xff]  ;;  %v413_v20 = vld [vmem:[#allocation5 + $0x1c8] sm:$0xff]  ;;  %v415_v21 = vld [vmem:[#allocation5 + $0x1d8] sm:$0xff] }
  0x9a   : > { %1267 = vmatpush1.bf16.msra.mxu0 %v1266_v31  ;;  %v1302_v22 = vpack.c.bf16 %v410_v19, %v408_v18  ;;  %v1304_v23 = vpack.c.bf16 %v415_v21, %v413_v20  ;;  %v412_v24 = vld [vmem:[#allocation5 + $0x1c0] sm:$0xff]  ;;  %v414_v25 = vld [vmem:[#allocation5 + $0x1d0] sm:$0xff]  ;;  %v417_v26 = vld [vmem:[#allocation5 + $0x1e8] sm:$0xff] }
  0x9b   : > { %1269 = vmatprep.subr.bf16.mxu0 %v1268_v32  ;;  %v419_v27 = vld [vmem:[#allocation5 + $0x1f8] sm:$0xff]  ;;  %v1306_v28 = vpack.c.bf16 %v414_v25, %v412_v24  ;;  %v416_v30 = vld [vmem:[#allocation5 + $0x1e0] sm:$0xff]  ;;  %v418_v31 = vld [vmem:[#allocation5 + $0x1f0] sm:$0xff] }
  0x9c   : > { %v1308_v29 = vpack.c.bf16 %v419_v27, %v417_v26  ;;  %v421_v32 = vld [vmem:[#allocation5 + $0x208] sm:$0xff]  ;;  %v423_v33 = vld [vmem:[#allocation5 + $0x218] sm:$0xff]  ;;  %v1310_v34 = vpack.c.bf16 %v418_v31, %v416_v30  ;;  %v420_v36 = vld [vmem:[#allocation5 + $0x200] sm:$0xff] }
  0x9d   : > { %v1312_v35 = vpack.c.bf16 %v423_v33, %v421_v32  ;;  %v427_v39 = vld [vmem:[#allocation5 + $0x238] sm:$0xff]  ;;  %v344_v40 = vld [vmem:[%s2112_s20] sm:$0xff]  ;;  %v429_v46 = vld [vmem:[#allocation5 + $0x248] sm:$0xff] }
  0x9e   : > { %1271 = vmatpush1.bf16.msra.mxu0 %v1270_v37  ;;  %v422_v37 = vld [vmem:[#allocation5 + $0x210] sm:$0xff]  ;;  %v424_v43 = vld [vmem:[#allocation5 + $0x220] sm:$0xff]  ;;  %v431_v47 = vld [vmem:[#allocation5 + $0x258] sm:$0xff] }
  0x9f   : > { %1273 = vmatprep.subr.bf16.mxu0 %v1272_v38  ;;  %v425_v38 = vld [vmem:[#allocation5 + $0x228] sm:$0xff]  ;;  %v1314_v41 = vpack.c.bf16 %v422_v37, %v420_v36  ;;  %v350_v49 = vld [vmem:[%s2112_s20 + $0x30] sm:$0xff]  ;;  %v347_v53 = vld [vmem:[%s2112_s20 + $0x18] sm:$0xff] }
  0xa0   : > { %v1316_v42 = vpack.c.bf16 %v427_v39, %v425_v38  ;;  %v430_v52 = vld [vmem:[#allocation5 + $0x250] sm:$0xff]  ;;  %v433_v54 = vld [vmem:[#allocation5 + $0x268] sm:$0xff]  ;;  %v435_v55 = vld [vmem:[#allocation5 + $0x278] sm:$0xff] }
  0xa1   : > { %v796_v58 = vld [vmem:[#allocation7 + $0x8] sm:$0xff]  ;;  %v798_v59 = vld [vmem:[#allocation7 + $0x18] sm:$0xff]  ;;  %v795_v60 = vld [vmem:[#allocation7] sm:$0xff]  ;;  %v1324_v2 = vpack.c.bf16 %v435_v55, %v433_v54 }
  0xa2   : > { %1275 = vmatpush1.bf16.msra.mxu0 %v1274_v44  ;;  %v426_v44 = vld [vmem:[#allocation5 + $0x230] sm:$0xff]  ;;  %v800_v0 = vld [vmem:[#allocation7 + $0x28] sm:$0xff]  ;;  %v802_v1 = vld [vmem:[#allocation7 + $0x38] sm:$0xff] }
  0xa3   : > { %1277 = vmatprep.subr.bf16.mxu0 %v1276_v45  ;;  %v351_v45 = vld [vmem:[%s2112_s20 + $0x38] sm:$0xff]  ;;  %v1318_v48 = vpack.c.bf16 %v426_v44, %v424_v43  ;;  %v801_v6 = vld [vmem:[#allocation7 + $0x30] sm:$0xff]  ;;  %v804_v7 = vld [vmem:[#allocation7 + $0x48] sm:$0xff] }
  0xa4   : > { %v437_v8 = vld [vmem:[#allocation5 + $0x288] sm:$0xff]  ;;  %v439_v9 = vld [vmem:[#allocation5 + $0x298] sm:$0xff]  ;;  %v436_v13 = vld [vmem:[#allocation5 + $0x280] sm:$0xff] }
  0xa5   : > { %v803_v15 = vld [vmem:[#allocation7 + $0x40] sm:$0xff]  ;;  %v438_v18 = vld [vmem:[#allocation5 + $0x290] sm:$0xff]  ;;  %v808_v19 = vld [vmem:[#allocation7 + $0x68] sm:$0xff] }
  0xa6   : > { %1279 = vmatpush1.bf16.msra.mxu0 %v1278_v50  ;;  %v1320_v50 = vpack.c.bf16 %v431_v47, %v429_v46  ;;  %v810_v20 = vld [vmem:[#allocation7 + $0x78] sm:$0xff]  ;;  %v441_v21 = vld [vmem:[#allocation5 + $0x2a8] sm:$0xff]  ;;  %v1330_v24 = vpack.c.bf16 %v438_v18, %v436_v13  ;;  %v440_v25 = vld [vmem:[#allocation5 + $0x2a0] sm:$0xff] }
  0xa7   : > { %1281 = vmatprep.subr.bf16.mxu0 %v1280_v51  ;;  %v428_v51 = vld [vmem:[#allocation5 + $0x240] sm:$0xff]  ;;  %v1452_v26 = vpack.c.bf16 %v810_v20, %v808_v19  ;;  %v442_v30 = vld [vmem:[#allocation5 + $0x2b0] sm:$0xff]  ;;  %v812_v31 = vld [vmem:[#allocation7 + $0x88] sm:$0xff] }
  0xa8   : > { %v1322_v61 = vpack.c.bf16 %v430_v52, %v428_v51  ;;  %v807_v27 = vld [vmem:[#allocation7 + $0x60] sm:$0xff]  ;;  %v814_v32 = vld [vmem:[#allocation7 + $0x98] sm:$0xff]  ;;  %v445_v33 = vld [vmem:[#allocation5 + $0x2c8] sm:$0xff]  ;;  %v1334_v36 = vpack.c.bf16 %v442_v30, %v440_v25 }
  0xa9   : > { %v444_v37 = vld [vmem:[#allocation5 + $0x2c0] sm:$0xff]  ;;  %v1456_v38 = vpack.c.bf16 %v814_v32, %v812_v31  ;;  %v816_v43 = vld [vmem:[#allocation7 + $0xa8] sm:$0xff]  ;;  %v818_v44 = vld [vmem:[#allocation7 + $0xb8] sm:$0xff] }
  0xaa   : > { %1283 = vmatpush1.bf16.msra.mxu0 %v1282_v56  ;;  %v432_v56 = vld [vmem:[#allocation5 + $0x260] sm:$0xff]  ;;  %v451_v46 = vld [vmem:[#allocation5 + $0x2f8] sm:$0xff]  ;;  %v817_v52 = vld [vmem:[#allocation7 + $0xb0] sm:$0xff] }
  0xab   : > { %1285 = vmatprep.subr.bf16.mxu0 %v1284_v57  ;;  %v434_v57 = vld [vmem:[#allocation5 + $0x270] sm:$0xff]  ;;  %v811_v39 = vld [vmem:[#allocation7 + $0x80] sm:$0xff]  ;;  %v820_v55 = vld [vmem:[#allocation7 + $0xc8] sm:$0xff] }
  0xac   : > { %v1326_v12 = vpack.c.bf16 %v434_v57, %v432_v56  ;;  %v815_v51 = vld [vmem:[#allocation7 + $0xa0] sm:$0xff]  ;;  %v450_v54 = vld [vmem:[#allocation5 + $0x2f0] sm:$0xff]  ;;  %v822_v56 = vld [vmem:[#allocation7 + $0xd8] sm:$0xff] }
  0xad   : > { %v453_v57 = vld [vmem:[#allocation5 + $0x308] sm:$0xff]  ;;  %v463_v18 = vld [vmem:[#allocation5 + $0x358] sm:$0xff] }
  0xae   : > { %1287 = vmatpush1.bf16.msra.mxu0 %v1286_v62  ;;  %v1440_v62 = vpack.c.bf16 %v798_v59, %v796_v58  ;;  %v455_v58 = vld [vmem:[#allocation5 + $0x318] sm:$0xff]  ;;  %v1462_v59 = vpack.c.bf16 %v817_v52, %v815_v51  ;;  %v840_v51 = vld [vmem:[#allocation7 + $0x168] sm:$0xff] }
  0xaf   : > { %1289 = vmatprep.subr.bf16.mxu0 %v1288_v63  ;;  %v797_v63 = vld [vmem:[#allocation7 + $0x10] sm:$0xff]  ;;  %v467_v30 = vld [vmem:[#allocation5 + $0x378] sm:$0xff] }
  0xb0   : > { %v1442_v3 = vpack.c.bf16 %v797_v63, %v795_v60  ;;  %1441 = vmatprep.subr.bf16.mxu1 %v1440_v62  ;;  %v1464_v62 = vpack.c.bf16 %v822_v56, %v820_v55  ;;  %v819_v63 = vld [vmem:[#allocation7 + $0xc0] sm:$0xff]  ;;  %v842_v52 = vld [vmem:[#allocation7 + $0x178] sm:$0xff] }
  0xb2   : > { %1291 = vmatpush1.bf16.msra.mxu0 %v1290_v4  ;;  %v1444_v4 = vpack.c.bf16 %v802_v1, %v800_v0  ;;  %1443 = vmatpush1.bf16.msra.mxu1 %v1442_v3  ;;  %v821_v0 = vld [vmem:[#allocation7 + $0xd0] sm:$0xff]  ;;  %v1344_v1 = vpack.c.bf16 %v455_v58, %v453_v57  ;;  %v824_v3 = vld [vmem:[#allocation7 + $0xe8] sm:$0xff]  ;;  %v472_v57 = vld [vmem:[#allocation5 + $0x3a0] sm:$0xff]  ;;  %v1484_v58 = vpack.c.bf16 %v842_v52, %v840_v51 }
  0xb3   : > { %1293 = vmatprep.subr.bf16.mxu0 %v1292_v5  ;;  %v799_v5 = vld [vmem:[#allocation7 + $0x20] sm:$0xff] }
  0xb4   : > { %1445 = vmatprep.subr.bf16.mxu1 %v1444_v4  ;;  %v826_v4 = vld [vmem:[#allocation7 + $0xf8] sm:$0xff] }
  0xb6   : > { %1295 = vmatpush1.bf16.msra.mxu0 %v1294_v10  ;;  %v806_v10 = vld [vmem:[#allocation7 + $0x58] sm:$0xff] }
  0xb7   : > { %1297 = vmatprep.subr.bf16.mxu0 %v1296_v11  ;;  %v1446_v11 = vpack.c.bf16 %v801_v6, %v799_v5  ;;  %v1448_v14 = vpack.c.bf16 %v806_v10, %v804_v7  ;;  %v457_v5 = vld [vmem:[#allocation5 + $0x328] sm:$0xff]  ;;  %v459_v6 = vld [vmem:[#allocation5 + $0x338] sm:$0xff]  ;;  %v1466_v7 = vpack.c.bf16 %v821_v0, %v819_v63  ;;  %v1468_v10 = vpack.c.bf16 %v826_v4, %v824_v3 }
  0xb8   : > { %v1348_v13 = vpack.c.bf16 %v459_v6, %v457_v5  ;;  %v844_v63 = vld [vmem:[#allocation7 + $0x188] sm:$0xff]  ;;  %v846_v0 = vld [vmem:[#allocation7 + $0x198] sm:$0xff]  ;;  %v476_v5 = vld [vmem:[#allocation5 + $0x3c0] sm:$0xff] }
  0xb9   : > { %1447 = vmatpush1.bf16.msra.mxu1 %v1446_v11  ;;  %v823_v11 = vld [vmem:[#allocation7 + $0xe0] sm:$0xff]  ;;  %v1488_v6 = vpack.c.bf16 %v846_v0, %v844_v63 }
  0xba   : > { %1299 = vmatpush1.bf16.msra.mxu0 %v1298_v16  ;;  %v805_v16 = vld [vmem:[#allocation7 + $0x50] sm:$0xff]  ;;  %1449 = vmatprep.subr.bf16.mxu1 %v1448_v14 }
  0xbb   : > { %1301 = vmatprep.subr.bf16.mxu0 %v1300_v17  ;;  %v1328_v17 = vpack.c.bf16 %v439_v9, %v437_v8  ;;  %v456_v9 = vld [vmem:[#allocation5 + $0x320] sm:$0xff]  ;;  %v458_v14 = vld [vmem:[#allocation5 + $0x330] sm:$0xff] }
  0xbc   : > { %v1350_v20 = vpack.c.bf16 %v458_v14, %v456_v9  ;;  %v483_v14 = vld [vmem:[#allocation5 + $0x3f8] sm:$0xff] }
  0xbe   : > { %1303 = vmatpush1.bf16.msra.mxu0 %v1302_v22  ;;  %v443_v22 = vld [vmem:[#allocation5 + $0x2b8] sm:$0xff] }
  0xbf   : > { %1305 = vmatprep.subr.bf16.mxu0 %v1304_v23  ;;  %v1450_v23 = vpack.c.bf16 %v805_v16, %v803_v15  ;;  %v828_v15 = vld [vmem:[#allocation7 + $0x108] sm:$0xff]  ;;  %v830_v16 = vld [vmem:[#allocation7 + $0x118] sm:$0xff] }
  0xc1   : > { %1451 = vmatpush1.bf16.msra.mxu1 %v1450_v23  ;;  %v827_v23 = vld [vmem:[#allocation7 + $0x100] sm:$0xff] }
  0xc2   : > { %1307 = vmatpush1.bf16.msra.mxu0 %v1306_v28  ;;  %v809_v28 = vld [vmem:[#allocation7 + $0x70] sm:$0xff]  ;;  %1453 = vmatprep.subr.bf16.mxu1 %v1452_v26 }
  0xc3   : > { %1309 = vmatprep.subr.bf16.mxu0 %v1308_v29  ;;  %v1332_v29 = vpack.c.bf16 %v443_v22, %v441_v21  ;;  %v460_v21 = vld [vmem:[#allocation5 + $0x340] sm:$0xff]  ;;  %v1472_v22 = vpack.c.bf16 %v830_v16, %v828_v15  ;;  %v462_v26 = vld [vmem:[#allocation5 + $0x350] sm:$0xff] }
  0xc4   : > { %v1354_v32 = vpack.c.bf16 %v462_v26, %v460_v21  ;;  %v487_v26 = vld [vmem:[#allocation5 + $0x418] sm:$0xff] }
  0xc6   : > { %1311 = vmatpush1.bf16.msra.mxu0 %v1310_v34  ;;  %v447_v34 = vld [vmem:[#allocation5 + $0x2d8] sm:$0xff] }
  0xc7   : > { %1313 = vmatprep.subr.bf16.mxu0 %v1312_v35  ;;  %v1454_v35 = vpack.c.bf16 %v809_v28, %v807_v27  ;;  %v832_v27 = vld [vmem:[#allocation7 + $0x128] sm:$0xff]  ;;  %v834_v28 = vld [vmem:[#allocation7 + $0x138] sm:$0xff] }
  0xc9   : > { %625 = vmatmul.mubr.f32.vlgmr.msra.gmra.mrb[0].mxu0 %v344_v40  ;;  %v813_v40 = vld [vmem:[#allocation7 + $0x90] sm:$0xff]  ;;  %1455 = vmatpush1.bf16.msra.mxu1 %v1454_v35  ;;  %v831_v35 = vld [vmem:[#allocation7 + $0x120] sm:$0xff] }
  0xca   : > { %1315 = vmatpush1.bf16.msra.mxu0 %v1314_v41  ;;  %630 = vmatprep.mubr.f32.mxu0 %v351_v45  ;;  %v1336_v41 = vpack.c.bf16 %v447_v34, %v445_v33  ;;  %v449_v45 = vld [vmem:[#allocation5 + $0x2e8] sm:$0xff]  ;;  %v1458_v47 = vpack.c.bf16 %v813_v40, %v811_v39  ;;  %v464_v33 = vld [vmem:[#allocation5 + $0x360] sm:$0xff]  ;;  %v1476_v34 = vpack.c.bf16 %v834_v28, %v832_v27  ;;  %v838_v40 = vld [vmem:[#allocation7 + $0x158] sm:$0xff] }
  0xcb   : > { %1317 = vmatprep.subr.bf16.mxu0 %v1316_v42  ;;  %v446_v42 = vld [vmem:[#allocation5 + $0x2d0] sm:$0xff]  ;;  %1457 = vmatprep.subr.bf16.mxu1 %v1456_v38  ;;  %v836_v39 = vld [vmem:[#allocation7 + $0x148] sm:$0xff] }
  0xcc   : > { %v466_v38 = vld [vmem:[#allocation5 + $0x370] sm:$0xff] }
  0xcd   : > { %631 = vmatmul.mubr.f32.gmra.mrb[2].mxu0 %v350_v49  ;;  %v448_v49 = vld [vmem:[#allocation5 + $0x2e0] sm:$0xff]  ;;  %1459 = vmatpush1.bf16.msra.mxu1 %v1458_v47 }
  0xce   : > { %1319 = vmatpush1.bf16.msra.mxu0 %v1318_v48  ;;  %701 = vmatprep.mubr.f32.mxu0 %v347_v53  ;;  %v1338_v48 = vpack.c.bf16 %v446_v42, %v444_v37  ;;  %v1340_v53 = vpack.c.bf16 %v451_v46, %v449_v45  ;;  %v1342_v60 = vpack.c.bf16 %v450_v54, %v448_v49  ;;  %v471_v42 = vld [vmem:[#allocation5 + $0x398] sm:$0xff]  ;;  %v468_v45 = vld [vmem:[#allocation5 + $0x380] sm:$0xff] }
  0xcf   : > { %1321 = vmatprep.subr.bf16.mxu0 %v1320_v50  ;;  %v1460_v50 = vpack.c.bf16 %v818_v44, %v816_v43  ;;  %v1358_v44 = vpack.c.bf16 %v466_v38, %v464_v33  ;;  %v1480_v46 = vpack.c.bf16 %v838_v40, %v836_v39  ;;  %v835_v47 = vld [vmem:[#allocation7 + $0x140] sm:$0xff]  ;;  %v475_v54 = vld [vmem:[#allocation5 + $0x3b8] sm:$0xff]  ;;  %v489_v33 = vld [vmem:[#allocation5 + $0x428] sm:$0xff] }
  0xd0   : > { %v488_v38 = vld [vmem:[#allocation5 + $0x420] sm:$0xff]  ;;  %v490_v39 = vld [vmem:[#allocation5 + $0x430] sm:$0xff]  ;;  %v353_v40 = vld [vmem:[%s2112_s20 + $0x48] sm:$0xff] }
  0xd1   : > { %1461 = vmatprep.subr.bf16.mxu1 %v1460_v50  ;;  %v470_v50 = vld [vmem:[#allocation5 + $0x390] sm:$0xff] }
  0xd2   : > { %1323 = vmatpush1.bf16.msra.mxu0 %v1322_v61  ;;  %v452_v61 = vld [vmem:[#allocation5 + $0x300] sm:$0xff]  ;;  %1463 = vmatpush1.bf16.msra.mxu1 %v1462_v59  ;;  %v1362_v56 = vpack.c.bf16 %v470_v50, %v468_v45  ;;  %v499_v50 = vld [vmem:[#allocation5 + $0x478] sm:$0xff] }
  0xd3   : > { %1325 = vmatprep.subr.bf16.mxu0 %v1324_v2  ;;  %v454_v2 = vld [vmem:[#allocation5 + $0x310] sm:$0xff]  ;;  %1465 = vmatprep.subr.bf16.mxu1 %v1464_v62  ;;  %v839_v59 = vld [vmem:[#allocation7 + $0x160] sm:$0xff] }
  0xd4   : > { %v1346_v8 = vpack.c.bf16 %v454_v2, %v452_v61  ;;  %v474_v62 = vld [vmem:[#allocation5 + $0x3b0] sm:$0xff]  ;;  %v479_v2 = vld [vmem:[#allocation5 + $0x3d8] sm:$0xff] }
  0xd5   : > { %v1366_v4 = vpack.c.bf16 %v474_v62, %v472_v57  ;;  %v507_v62 = vld [vmem:[#allocation5 + $0x4b8] sm:$0xff] }
  0xd6   : > { %1327 = vmatpush1.bf16.msra.mxu0 %v1326_v12  ;;  %v825_v12 = vld [vmem:[#allocation7 + $0xf0] sm:$0xff]  ;;  %1467 = vmatpush1.bf16.msra.mxu1 %v1466_v7  ;;  %v843_v7 = vld [vmem:[#allocation7 + $0x180] sm:$0xff] }
  0xd7   : > { %1329 = vmatprep.subr.bf16.mxu0 %v1328_v17  ;;  %v461_v17 = vld [vmem:[#allocation5 + $0x348] sm:$0xff]  ;;  %v1470_v19 = vpack.c.bf16 %v825_v12, %v823_v11  ;;  %1469 = vmatprep.subr.bf16.mxu1 %v1468_v10  ;;  %v478_v10 = vld [vmem:[#allocation5 + $0x3d0] sm:$0xff]  ;;  %v850_v12 = vld [vmem:[#allocation7 + $0x1b8] sm:$0xff] }
  0xd8   : > { %v1352_v25 = vpack.c.bf16 %v463_v18, %v461_v17  ;;  %v848_v11 = vld [vmem:[#allocation7 + $0x1a8] sm:$0xff]  ;;  %v1370_v16 = vpack.c.bf16 %v478_v10, %v476_v5  ;;  %v480_v17 = vld [vmem:[#allocation5 + $0x3e0] sm:$0xff]  ;;  %v515_v10 = vld [vmem:[#allocation5 + $0x4f8] sm:$0xff] }
  0xd9   : > { %v1492_v18 = vpack.c.bf16 %v850_v12, %v848_v11 }
  0xda   : > { %1331 = vmatpush1.bf16.msra.mxu0 %v1330_v24  ;;  %v829_v24 = vld [vmem:[#allocation7 + $0x110] sm:$0xff]  ;;  %1471 = vmatpush1.bf16.msra.mxu1 %v1470_v19  ;;  %v847_v19 = vld [vmem:[#allocation7 + $0x1a0] sm:$0xff] }
  0xdb   : > { %1333 = vmatprep.subr.bf16.mxu0 %v1332_v29  ;;  %v465_v29 = vld [vmem:[#allocation5 + $0x368] sm:$0xff]  ;;  %v1474_v31 = vpack.c.bf16 %v829_v24, %v827_v23  ;;  %1473 = vmatprep.subr.bf16.mxu1 %v1472_v22  ;;  %v482_v22 = vld [vmem:[#allocation5 + $0x3f0] sm:$0xff]  ;;  %v854_v24 = vld [vmem:[#allocation7 + $0x1d8] sm:$0xff] }
  0xdc   : > { %v1356_v37 = vpack.c.bf16 %v467_v30, %v465_v29  ;;  %v852_v23 = vld [vmem:[#allocation7 + $0x1c8] sm:$0xff]  ;;  %v1374_v28 = vpack.c.bf16 %v482_v22, %v480_v17  ;;  %v523_v22 = vld [vmem:[#allocation5 + $0x538] sm:$0xff] }
  0xdd   : > { %v1496_v29 = vpack.c.bf16 %v854_v24, %v852_v23 }
  0xde   : > { %1335 = vmatpush1.bf16.msra.mxu0 %v1334_v36  ;;  %v833_v36 = vld [vmem:[#allocation7 + $0x130] sm:$0xff]  ;;  %1475 = vmatpush1.bf16.msra.mxu1 %v1474_v31  ;;  %v484_v31 = vld [vmem:[#allocation5 + $0x400] sm:$0xff] }
  0xdf   : > { %1337 = vmatprep.subr.bf16.mxu0 %v1336_v41  ;;  %v469_v41 = vld [vmem:[#allocation5 + $0x388] sm:$0xff]  ;;  %v1478_v43 = vpack.c.bf16 %v833_v36, %v831_v35  ;;  %1477 = vmatprep.subr.bf16.mxu1 %v1476_v34  ;;  %v491_v34 = vld [vmem:[#allocation5 + $0x438] sm:$0xff]  ;;  %v346_v35 = vld [vmem:[%s2112_s20 + $0x10] sm:$0xff] }
  0xe0   : > { %v1360_v49 = vpack.c.bf16 %v471_v42, %v469_v41  ;;  %v493_v41 = vld [vmem:[#allocation5 + $0x448] sm:$0xff]  ;;  %v495_v42 = vld [vmem:[#allocation5 + $0x458] sm:$0xff] }
  0xe1   : > { %v1384_v45 = vpack.c.bf16 %v495_v42, %v493_v41 }
  0xe2   : > { %1339 = vmatpush1.bf16.msra.mxu0 %v1338_v48  ;;  %v837_v48 = vld [vmem:[#allocation7 + $0x150] sm:$0xff]  ;;  %1479 = vmatpush1.bf16.msra.mxu1 %v1478_v43  ;;  %v1382_v43 = vpack.c.bf16 %v490_v39, %v488_v38  ;;  %v533_v39 = vld [vmem:[#allocation5 + $0x588] sm:$0xff] }
  0xe3   : > { %1341 = vmatprep.subr.bf16.mxu0 %v1340_v53  ;;  %v473_v53 = vld [vmem:[#allocation5 + $0x3a8] sm:$0xff]  ;;  %v1482_v55 = vpack.c.bf16 %v837_v48, %v835_v47  ;;  %1481 = vmatprep.subr.bf16.mxu1 %v1480_v46  ;;  %v492_v46 = vld [vmem:[#allocation5 + $0x440] sm:$0xff]  ;;  %v494_v47 = vld [vmem:[#allocation5 + $0x450] sm:$0xff] }
  0xe4   : > { %v1364_v61 = vpack.c.bf16 %v475_v54, %v473_v53  ;;  %v349_v48 = vld [vmem:[%s2112_s20 + $0x28] sm:$0xff]  ;;  %v1386_v51 = vpack.c.bf16 %v494_v47, %v492_v46  ;;  %v496_v53 = vld [vmem:[#allocation5 + $0x460] sm:$0xff]  ;;  %v498_v54 = vld [vmem:[#allocation5 + $0x470] sm:$0xff] }
  0xe5   : > { %v1390_v57 = vpack.c.bf16 %v498_v54, %v496_v53  ;;  %v530_v38 = vld [vmem:[#allocation5 + $0x570] sm:$0xff]  ;;  %v539_v46 = vld [vmem:[#allocation5 + $0x5b8] sm:$0xff] }
  0xe6   : > { %1343 = vmatpush1.bf16.msra.mxu0 %v1342_v60  ;;  %v841_v60 = vld [vmem:[#allocation7 + $0x170] sm:$0xff]  ;;  %1483 = vmatpush1.bf16.msra.mxu1 %v1482_v55  ;;  %v501_v55 = vld [vmem:[#allocation5 + $0x488] sm:$0xff] }
  0xe7   : > { %1345 = vmatprep.subr.bf16.mxu0 %v1344_v1  ;;  %v477_v1 = vld [vmem:[#allocation5 + $0x3c8] sm:$0xff]  ;;  %v1486_v3 = vpack.c.bf16 %v841_v60, %v839_v59  ;;  %1485 = vmatprep.subr.bf16.mxu1 %v1484_v58  ;;  %v500_v59 = vld [vmem:[#allocation5 + $0x480] sm:$0xff]  ;;  %v502_v60 = vld [vmem:[#allocation5 + $0x490] sm:$0xff] }
  0xe8   : > { %v1368_v9 = vpack.c.bf16 %v479_v2, %v477_v1  ;;  %v1394_v63 = vpack.c.bf16 %v502_v60, %v500_v59  ;;  %v504_v1 = vld [vmem:[#allocation5 + $0x4a0] sm:$0xff]  ;;  %v506_v2 = vld [vmem:[#allocation5 + $0x4b0] sm:$0xff] }
  0xe9   : > { %v1398_v5 = vpack.c.bf16 %v506_v2, %v504_v1  ;;  %v355_v1 = vld [vmem:[%s2112_s20 + $0x58] sm:$0xff]  ;;  %v354_v2 = vld [vmem:[%s2112_s20 + $0x50] sm:$0xff] }
  0xea   : > { %1347 = vmatpush1.bf16.msra.mxu0 %v1346_v8  ;;  %v845_v8 = vld [vmem:[#allocation7 + $0x190] sm:$0xff]  ;;  %1487 = vmatpush1.bf16.msra.mxu1 %v1486_v3  ;;  %v509_v3 = vld [vmem:[#allocation5 + $0x4c8] sm:$0xff] }
  0xeb   : > { %1349 = vmatprep.subr.bf16.mxu0 %v1348_v13  ;;  %v481_v13 = vld [vmem:[#allocation5 + $0x3e8] sm:$0xff]  ;;  %v1490_v15 = vpack.c.bf16 %v845_v8, %v843_v7  ;;  %1489 = vmatprep.subr.bf16.mxu1 %v1488_v6  ;;  %v508_v7 = vld [vmem:[#allocation5 + $0x4c0] sm:$0xff]  ;;  %v510_v8 = vld [vmem:[#allocation5 + $0x4d0] sm:$0xff] }
  0xec   : > { %v1372_v21 = vpack.c.bf16 %v483_v14, %v481_v13  ;;  %v1402_v11 = vpack.c.bf16 %v510_v8, %v508_v7  ;;  %v512_v13 = vld [vmem:[#allocation5 + $0x4e0] sm:$0xff]  ;;  %v514_v14 = vld [vmem:[#allocation5 + $0x4f0] sm:$0xff]  ;;  %v858_v7 = vld [vmem:[#allocation7 + $0x1f8] sm:$0xff] }
  0xed   : > { %v1406_v17 = vpack.c.bf16 %v514_v14, %v512_v13  ;;  %v955_v13 = vld [vmem:[#allocation8 + $0x18] sm:$0xff] }
  0xee   : > { %1351 = vmatpush1.bf16.msra.mxu0 %v1350_v20  ;;  %v849_v20 = vld [vmem:[#allocation7 + $0x1b0] sm:$0xff]  ;;  %1491 = vmatpush1.bf16.msra.mxu1 %v1490_v15  ;;  %v517_v15 = vld [vmem:[#allocation5 + $0x508] sm:$0xff] }
  0xef   : > { %1353 = vmatprep.subr.bf16.mxu0 %v1352_v25  ;;  %v485_v25 = vld [vmem:[#allocation5 + $0x408] sm:$0xff]  ;;  %v1494_v27 = vpack.c.bf16 %v849_v20, %v847_v19  ;;  %1493 = vmatprep.subr.bf16.mxu1 %v1492_v18  ;;  %v516_v19 = vld [vmem:[#allocation5 + $0x500] sm:$0xff]  ;;  %v518_v20 = vld [vmem:[#allocation5 + $0x510] sm:$0xff] }
  0xf0   : > { %v1376_v30 = vpack.c.bf16 %v487_v26, %v485_v25  ;;  %v1410_v23 = vpack.c.bf16 %v518_v20, %v516_v19  ;;  %v520_v25 = vld [vmem:[#allocation5 + $0x520] sm:$0xff]  ;;  %v522_v26 = vld [vmem:[#allocation5 + $0x530] sm:$0xff] }
  0xf2   : > { %1355 = vmatpush1.bf16.msra.mxu0 %v1354_v32  ;;  %v486_v32 = vld [vmem:[#allocation5 + $0x410] sm:$0xff]  ;;  %1495 = vmatpush1.bf16.msra.mxu1 %v1494_v27  ;;  %v525_v27 = vld [vmem:[#allocation5 + $0x548] sm:$0xff] }
  0xf3   : > { %1357 = vmatprep.subr.bf16.mxu0 %v1356_v37  ;;  %v1378_v36 = vpack.c.bf16 %v486_v32, %v484_v31  ;;  %1497 = vmatprep.subr.bf16.mxu1 %v1496_v29  ;;  %v1380_v37 = vpack.c.bf16 %v491_v34, %v489_v33  ;;  %v1414_v29 = vpack.c.bf16 %v522_v26, %v520_v25  ;;  %v524_v31 = vld [vmem:[#allocation5 + $0x540] sm:$0xff]  ;;  %v526_v32 = vld [vmem:[#allocation5 + $0x550] sm:$0xff]  ;;  %v529_v33 = vld [vmem:[#allocation5 + $0x568] sm:$0xff] }
  0xf4   : > { %v531_v34 = vld [vmem:[#allocation5 + $0x578] sm:$0xff]  ;;  %v952_v25 = vld [vmem:[#allocation8] sm:$0xff]  ;;  %v954_v26 = vld [vmem:[#allocation8 + $0x10] sm:$0xff] }
  0xf6   : > { %1359 = vmatpush1.bf16.msra.mxu0 %v1358_v44  ;;  %v352_v44 = vld [vmem:[%s2112_s20 + $0x40] sm:$0xff] }
  0xf7   : > { %1361 = vmatprep.subr.bf16.mxu0 %v1360_v49  ;;  %v497_v49 = vld [vmem:[#allocation5 + $0x468] sm:$0xff] }
  0xf8   : > { %v1388_v52 = vpack.c.bf16 %v499_v50, %v497_v49  ;;  %v536_v49 = vld [vmem:[#allocation5 + $0x5a0] sm:$0xff]  ;;  %v538_v50 = vld [vmem:[#allocation5 + $0x5b0] sm:$0xff] }
  0xf9   : > { %v1430_v53 = vpack.c.bf16 %v538_v50, %v536_v49  ;;  %v967_v49 = vld [vmem:[#allocation8 + $0x78] sm:$0xff] }
  0xfa   : > { %1363 = vmatpush1.bf16.msra.mxu0 %v1362_v56  ;;  %v503_v56 = vld [vmem:[#allocation5 + $0x498] sm:$0xff] }
  0xfb   : > { %1365 = vmatprep.subr.bf16.mxu0 %v1364_v61  ;;  %v1392_v58 = vpack.c.bf16 %v503_v56, %v501_v55  ;;  %v505_v61 = vld [vmem:[#allocation5 + $0x4a8] sm:$0xff]  ;;  %v540_v55 = vld [vmem:[#allocation5 + $0x5c0] sm:$0xff]  ;;  %v542_v56 = vld [vmem:[#allocation5 + $0x5d0] sm:$0xff] }
  0xfc   : > { %v1396_v0 = vpack.c.bf16 %v507_v62, %v505_v61  ;;  %v1434_v59 = vpack.c.bf16 %v542_v56, %v540_v55  ;;  %v544_v61 = vld [vmem:[#allocation5 + $0x5e0] sm:$0xff]  ;;  %v546_v62 = vld [vmem:[#allocation5 + $0x5f0] sm:$0xff]  ;;  %v971_v55 = vld [vmem:[#allocation8 + $0x98] sm:$0xff] }
  0xfe   : > { %1367 = vmatpush1.bf16.msra.mxu0 %v1366_v4  ;;  %v511_v4 = vld [vmem:[#allocation5 + $0x4d8] sm:$0xff] }
  0xff   : > { %1369 = vmatprep.subr.bf16.mxu0 %v1368_v9  ;;  %v1400_v6 = vpack.c.bf16 %v511_v4, %v509_v3  ;;  %v513_v9 = vld [vmem:[#allocation5 + $0x4e8] sm:$0xff]  ;;  %v851_v3 = vld [vmem:[#allocation7 + $0x1c0] sm:$0xff]  ;;  %v853_v4 = vld [vmem:[#allocation7 + $0x1d0] sm:$0xff] }
 0x100   : > { %v1404_v12 = vpack.c.bf16 %v515_v10, %v513_v9  ;;  %v855_v9 = vld [vmem:[#allocation7 + $0x1e0] sm:$0xff]  ;;  %v857_v10 = vld [vmem:[#allocation7 + $0x1f0] sm:$0xff] }
 0x102   : > { %1371 = vmatpush1.bf16.msra.mxu0 %v1370_v16  ;;  %v519_v16 = vld [vmem:[#allocation5 + $0x518] sm:$0xff] }
 0x103   : > { %1373 = vmatprep.subr.bf16.mxu0 %v1372_v21  ;;  %v1408_v18 = vpack.c.bf16 %v519_v16, %v517_v15  ;;  %v521_v21 = vld [vmem:[#allocation5 + $0x528] sm:$0xff]  ;;  %v550_v15 = vlaneseq }
 0x104   : > { %v1412_v24 = vpack.c.bf16 %v523_v22, %v521_v21 }
 0x105   : > { %v551_v16 = vshrl.u32 %v550_v15, 7  ;;  %v987_v15 = vld [vmem:[#allocation8 + $0x118] sm:$0xff] }
 0x106   : > { %1375 = vmatpush1.bf16.msra.mxu0 %v1374_v28  ;;  %v527_v28 = vld [vmem:[#allocation5 + $0x558] sm:$0xff] }
 0x107   : > { %1377 = vmatprep.subr.bf16.mxu0 %v1376_v30  ;;  %v1416_v30 = vpack.c.bf16 %v527_v28, %v525_v27  ;;  %v2143_v19 = vsub.s32 1, %v551_v16  ;;  %v957_v28 = vld [vmem:[#allocation8 + $0x28] sm:$0xff] }
 0x109   : > { %702 = vmatmul.mubr.f32.vlgmr.msra.gmra.mrb[0].mxu0 %v346_v35  ;;  %v1418_v35 = vpack.c.bf16 %v526_v32, %v524_v31  ;;  %v1506_v32 = vpack.c.bf16 %v954_v26, %v952_v25  ;;  %v988_v26 = vld [vmem:[#allocation8 + $0x120] sm:$0xff] }
 0x10a   : > { %1379 = vmatpush1.bf16.msra.mxu0 %v1378_v36  ;;  %707 = vmatprep.mubr.f32.mxu0 %v353_v40  ;;  %v1420_v36 = vpack.c.bf16 %v531_v34, %v529_v33  ;;  %v535_v40 = vld [vmem:[#allocation5 + $0x598] sm:$0xff] }
 0x10b   : > { %1381 = vmatprep.subr.bf16.mxu0 %v1380_v37  ;;  %v528_v37 = vld [vmem:[#allocation5 + $0x560] sm:$0xff]  ;;  %v1424_v42 = vpack.c.bf16 %v535_v40, %v533_v39  ;;  %v961_v40 = vld [vmem:[#allocation8 + $0x48] sm:$0xff] }
 0x10c   : > { %v1422_v41 = vpack.c.bf16 %v530_v38, %v528_v37  ;;  %v956_v37 = vld [vmem:[#allocation8 + $0x20] sm:$0xff]  ;;  %v958_v38 = vld [vmem:[#allocation8 + $0x30] sm:$0xff] }
 0x10d   : > { %708 = vmatmul.mubr.f32.gmra.mrb[2].mxu0 %v352_v44  ;;  %v534_v44 = vld [vmem:[#allocation5 + $0x590] sm:$0xff] }
 0x10e   : > { %1383 = vmatpush1.bf16.msra.mxu0 %v1382_v43  ;;  %778 = vmatprep.mubr.f32.mxu0 %v349_v48  ;;  %v532_v43 = vld [vmem:[#allocation5 + $0x580] sm:$0xff] }
 0x10f   : > { %1385 = vmatprep.subr.bf16.mxu0 %v1384_v45  ;;  %v537_v45 = vld [vmem:[#allocation5 + $0x5a8] sm:$0xff]  ;;  %v1426_v47 = vpack.c.bf16 %v534_v44, %v532_v43  ;;  %v1510_v43 = vpack.c.bf16 %v958_v38, %v956_v37  ;;  %v996_v38 = vld [vmem:[#allocation8 + $0x160] sm:$0xff] }
 0x110   : > { %v1428_v48 = vpack.c.bf16 %v539_v46, %v537_v45  ;;  %v960_v46 = vld [vmem:[#allocation8 + $0x40] sm:$0xff] }
 0x112   : > { %1387 = vmatpush1.bf16.msra.mxu0 %v1386_v51  ;;  %v541_v51 = vld [vmem:[#allocation5 + $0x5c8] sm:$0xff] }
 0x113   : > { %1389 = vmatprep.subr.bf16.mxu0 %v1388_v52  ;;  %v543_v52 = vld [vmem:[#allocation5 + $0x5d8] sm:$0xff] }
 0x114   : > { %v1432_v54 = vpack.c.bf16 %v543_v52, %v541_v51  ;;  %v964_v52 = vld [vmem:[#allocation8 + $0x60] sm:$0xff] }
 0x116   : > { %1391 = vmatpush1.bf16.msra.mxu0 %v1390_v57  ;;  %v545_v57 = vld [vmem:[#allocation5 + $0x5e8] sm:$0xff] }
 0x117   : > { %1393 = vmatprep.subr.bf16.mxu0 %v1392_v58  ;;  %v547_v58 = vld [vmem:[#allocation5 + $0x5f8] sm:$0xff] }
 0x118   : > { %v1436_v60 = vpack.c.bf16 %v547_v58, %v545_v57  ;;  %v968_v58 = vld [vmem:[#allocation8 + $0x80] sm:$0xff] }
 0x11a   : > { %1395 = vmatpush1.bf16.msra.mxu0 %v1394_v63  ;;  %v1438_v63 = vpack.c.bf16 %v546_v62, %v544_v61  ;;  %v975_v61 = vld [vmem:[#allocation8 + $0xb8] sm:$0xff] }
 0x11b   : > { %1397 = vmatprep.subr.bf16.mxu0 %v1396_v0  ;;  %v348_v0 = vld [vmem:[%s2112_s20 + $0x20] sm:$0xff]  ;;  %s1110_s20 = scalar_lea.sflag [#allocation4], %s2108_s21 }
 0x11e   : > { %1399 = vmatpush1.bf16.msra.mxu0 %v1398_v5  ;;  %v1498_v5 = vpack.c.bf16 %v853_v4, %v851_v3  ;;  %v979_v3 = vld [vmem:[#allocation8 + $0xd8] sm:$0xff] }
 0x11f   : > { %1401 = vmatprep.subr.bf16.mxu0 %v1400_v6  ;;  %v856_v6 = vld [vmem:[#allocation7 + $0x1e8] sm:$0xff] }
 0x120   : > { %1499 = vmatpush1.bf16.msra.mxu1 %v1498_v5  ;;  %v1500_v8 = vpack.c.bf16 %v858_v7, %v856_v6  ;;  %v976_v6 = vld [vmem:[#allocation8 + $0xc0] sm:$0xff]  ;;  %v978_v7 = vld [vmem:[#allocation8 + $0xd0] sm:$0xff] }
 0x122   : > { %1403 = vmatpush1.bf16.msra.mxu0 %v1402_v11  ;;  %v1502_v11 = vpack.c.bf16 %v857_v10, %v855_v9  ;;  %1501 = vmatprep.subr.bf16.mxu1 %v1500_v8  ;;  %v981_v8 = vld [vmem:[#allocation8 + $0xe8] sm:$0xff]  ;;  %v983_v9 = vld [vmem:[#allocation8 + $0xf8] sm:$0xff]  ;;  %v1530_v10 = vpack.c.bf16 %v978_v7, %v976_v6 }
 0x123   : > { %1405 = vmatprep.subr.bf16.mxu0 %v1404_v12  ;;  %v953_v12 = vld [vmem:[#allocation8 + $0x8] sm:$0xff] }
 0x124   : > { %1503 = vmatpush1.bf16.msra.mxu1 %v1502_v11  ;;  %v1504_v14 = vpack.c.bf16 %v955_v13, %v953_v12  ;;  %v1532_v11 = vpack.c.bf16 %v983_v9, %v981_v8  ;;  %v980_v12 = vld [vmem:[#allocation8 + $0xe0] sm:$0xff]  ;;  %v982_v13 = vld [vmem:[#allocation8 + $0xf0] sm:$0xff] }
 0x126   : > { %1407 = vmatpush1.bf16.msra.mxu0 %v1406_v17  ;;  %1505 = vmatprep.subr.bf16.mxu1 %v1504_v14  ;;  %v2138_v17 = vsub.s32 0, %v551_v16  ;;  %v985_v14 = vld [vmem:[#allocation8 + $0x108] sm:$0xff]  ;;  %v1534_v16 = vpack.c.bf16 %v982_v13, %v980_v12 }
 0x127   : > { %1409 = vmatprep.subr.bf16.mxu0 %v1408_v18  ;;  %v548_v18 = vld [vmem:[%s2209_s2] sm:$0x3] }
 0x128   : > { %v553_v20 = vrot.slane %v548_v18, %v2138_v17  ;;  %v557_v21 = vrot.slane %v548_v18, %v2143_v19  ;;  %v1536_v18 = vpack.c.bf16 %v987_v15, %v985_v14 }
 0x12a   : > { %1411 = vmatpush1.bf16.msra.mxu0 %v1410_v23 }
 0x12b   : > { %1413 = vmatprep.subr.bf16.mxu0 %v1412_v24 }
 0x12e   : > { %1415 = vmatpush1.bf16.msra.mxu0 %v1414_v29  ;;  %v959_v29 = vld [vmem:[#allocation8 + $0x38] sm:$0xff] }
 0x12f   : > { %1417 = vmatprep.subr.bf16.mxu0 %v1416_v30 }
 0x132   : > { %1419 = vmatpush1.bf16.msra.mxu0 %v1418_v35 }
 0x133   : > { %1421 = vmatprep.subr.bf16.mxu0 %v1420_v36  ;;  %v1508_v36 = vpack.c.bf16 %v959_v29, %v957_v28  ;;  %v993_v28 = vld [vmem:[#allocation8 + $0x148] sm:$0xff]  ;;  %v995_v29 = vld [vmem:[#allocation8 + $0x158] sm:$0xff] }
 0x136   : > { %1423 = vmatpush1.bf16.msra.mxu0 %v1422_v41  ;;  %v963_v41 = vld [vmem:[#allocation8 + $0x58] sm:$0xff] }
 0x137   : > { %1425 = vmatprep.subr.bf16.mxu0 %v1424_v42  ;;  %v1512_v45 = vpack.c.bf16 %v963_v41, %v961_v40  ;;  %v1001_v40 = vld [vmem:[#allocation8 + $0x188] sm:$0xff]  ;;  %v1003_v41 = vld [vmem:[#allocation8 + $0x198] sm:$0xff] }
 0x13a   : > { %1427 = vmatpush1.bf16.msra.mxu0 %v1426_v47  ;;  %v962_v47 = vld [vmem:[#allocation8 + $0x50] sm:$0xff] }
 0x13b   : > { %1429 = vmatprep.subr.bf16.mxu0 %v1428_v48  ;;  %v965_v48 = vld [vmem:[#allocation8 + $0x68] sm:$0xff]  ;;  %v1514_v50 = vpack.c.bf16 %v962_v47, %v960_v46  ;;  %v1007_v47 = vld [vmem:[#allocation8 + $0x1b8] sm:$0xff] }
 0x13c   : > { %v1516_v51 = vpack.c.bf16 %v967_v49, %v965_v48  ;;  %v1005_v46 = vld [vmem:[#allocation8 + $0x1a8] sm:$0xff] }
 0x13d   : > { %v1556_v49 = vpack.c.bf16 %v1007_v47, %v1005_v46 }
 0x13e   : > { %1431 = vmatpush1.bf16.msra.mxu0 %v1430_v53  ;;  %v966_v53 = vld [vmem:[#allocation8 + $0x70] sm:$0xff] }
 0x13f   : > { %1433 = vmatprep.subr.bf16.mxu0 %v1432_v54  ;;  %v969_v54 = vld [vmem:[#allocation8 + $0x88] sm:$0xff]  ;;  %v1518_v56 = vpack.c.bf16 %v966_v53, %v964_v52  ;;  %v1011_v53 = vld [vmem:[#allocation8 + $0x1d8] sm:$0xff] }
 0x140   : > { %v1520_v57 = vpack.c.bf16 %v971_v55, %v969_v54  ;;  %v1009_v52 = vld [vmem:[#allocation8 + $0x1c8] sm:$0xff] }
 0x141   : > { %v1560_v55 = vpack.c.bf16 %v1011_v53, %v1009_v52 }
 0x142   : > { %1435 = vmatpush1.bf16.msra.mxu0 %v1434_v59  ;;  %v970_v59 = vld [vmem:[#allocation8 + $0x90] sm:$0xff] }
 0x143   : > { %1437 = vmatprep.subr.bf16.mxu0 %v1436_v60  ;;  %v973_v60 = vld [vmem:[#allocation8 + $0xa8] sm:$0xff]  ;;  %v1522_v62 = vpack.c.bf16 %v970_v59, %v968_v58 }
 0x144   : > { %v1013_v59 = vld [vmem:[#allocation8 + $0x1e8] sm:$0xff] }
 0x146   : > { %1439 = vmatpush1.bf16.msra.mxu0 %v1438_v63  ;;  %v1524_v63 = vpack.c.bf16 %v975_v61, %v973_v60  ;;  %v1015_v60 = vld [vmem:[#allocation8 + $0x1f8] sm:$0xff] }
 0x147   : > { %v1564_v61 = vpack.c.bf16 %v1015_v60, %v1013_v59 }
 0x149   : > { %779 = vmatmul.mubr.f32.vlgmr.msra.gmra.mrb[0].mxu0 %v348_v0  ;;  %v972_v0 = vld [vmem:[#allocation8 + $0xa0] sm:$0xff] }
 0x14a   : > { %784 = vmatprep.mubr.f32.mxu0 %v355_v1  ;;  %v974_v1 = vld [vmem:[#allocation8 + $0xb0] sm:$0xff] }
 0x14b   : > { %v1526_v4 = vpack.c.bf16 %v974_v1, %v972_v0  ;;  %v859_v1 = vld [vmem:[%s2211_s4] sm:$0x3] }
 0x14d   : > { %785 = vmatmul.mubr.f32.gmra.mrb[2].mxu0 %v354_v2  ;;  %v977_v2 = vld [vmem:[#allocation8 + $0xc8] sm:$0xff] }
 0x14e   : > { %v1528_v5 = vpack.c.bf16 %v979_v3, %v977_v2  ;;  %v864_v2 = vrot.slane %v859_v1, %v2138_v17  ;;  %v868_v3 = vrot.slane %v859_v1, %v2143_v19 }
 0x21c   : > { %v780_v22 = vpop.f32.mrb[0].mxu0 }
 0x21d   : > { %v1568_v23 = vadd.f32 %v780_v22, %v553_v20  ;;  %v782_v24 = vpop.f32.mrb[1].mxu0  ;;  %v989_v22 = vld [vmem:[#allocation8 + $0x128] sm:$0xff] }
 0x21e   : > { %v1569_v27 = vadd.f32 %v782_v24, %v557_v21 }
 0x21f   : > { %v791_v33 = vmax.f32 %v1568_v23, 0.0  ;;  %v991_v23 = vld [vmem:[#allocation8 + $0x138] sm:$0xff] }
 0x220   : > { %v786_v30 = vpop.f32.mrb[2].mxu0  ;;  %v792_v31 = vmax.f32 %v1569_v27, 0.0  ;;  %v1540_v25 = vpack.c.bf16 %v991_v23, %v989_v22  ;;  %v990_v27 = vld [vmem:[#allocation8 + $0x130] sm:$0xff] }
 0x221   : > { %v1570_v34 = vadd.f32 %v786_v30, %v553_v20  ;;  %v788_v35 = vpop.f32.mrb[3].mxu0  ;;  %v984_v20 = vld [vmem:[#allocation8 + $0x100] sm:$0xff]  ;;  %v1542_v30 = vpack.c.bf16 %v990_v27, %v988_v26 }
 0x222   : > { %v1571_v39 = vadd.f32 %v788_v35, %v557_v21  ;;  %935 = vmatprep.mubr.f32.mxu1 %v792_v31  ;;  %v986_v21 = vld [vmem:[#allocation8 + $0x110] sm:$0xff]  ;;  %v1544_v31 = vpack.c.bf16 %v995_v29, %v993_v28  ;;  %v999_v35 = vld [vmem:[#allocation8 + $0x178] sm:$0xff] }
 0x223   : > { %936 = vmatmul.mubr.f32.vlgmr.msra.gmra.mrb[0].mxu1 %v791_v33  ;;  %v793_v44 = vmax.f32 %v1570_v34, 0.0  ;;  %v1538_v24 = vpack.c.bf16 %v986_v21, %v984_v20  ;;  %v994_v33 = vld [vmem:[#allocation8 + $0x150] sm:$0xff]  ;;  %v997_v34 = vld [vmem:[#allocation8 + $0x168] sm:$0xff] }
 0x224   : > { %v794_v42 = vmax.f32 %v1571_v39, 0.0  ;;  %1507 = vmatpush1.bf16.msra.mxu1 %v1506_v32  ;;  %v992_v32 = vld [vmem:[#allocation8 + $0x140] sm:$0xff]  ;;  %v1548_v37 = vpack.c.bf16 %v999_v35, %v997_v34  ;;  %v998_v39 = vld [vmem:[#allocation8 + $0x170] sm:$0xff] }
 0x225   : > { %1509 = vmatprep.subr.bf16.mxu1 %v1508_v36  ;;  %v1546_v36 = vpack.c.bf16 %v994_v33, %v992_v32 }
 0x226   : > { %941 = vmatprep.mubr.f32.mxu1 %v794_v42  ;;  %v1550_v42 = vpack.c.bf16 %v998_v39, %v996_v38 }
 0x227   : > { %942 = vmatmul.mubr.f32.gmra.mrb[2].mxu1 %v793_v44  ;;  %v1000_v44 = vld [vmem:[#allocation8 + $0x180] sm:$0xff] }
 0x228   : > { %1511 = vmatpush1.bf16.msra.mxu1 %v1510_v43  ;;  %v1552_v43 = vpack.c.bf16 %v1003_v41, %v1001_v40 }
 0x229   : > { %1513 = vmatprep.subr.bf16.mxu1 %v1512_v45  ;;  %v1002_v45 = vld [vmem:[#allocation8 + $0x190] sm:$0xff] }
 0x22a   : > { %v1554_v48 = vpack.c.bf16 %v1002_v45, %v1000_v44 }
 0x22c   : > { %1515 = vmatpush1.bf16.msra.mxu1 %v1514_v50  ;;  %v1004_v50 = vld [vmem:[#allocation8 + $0x1a0] sm:$0xff] }
 0x22d   : > { %1517 = vmatprep.subr.bf16.mxu1 %v1516_v51  ;;  %v1006_v51 = vld [vmem:[#allocation8 + $0x1b0] sm:$0xff] }
 0x22e   : > { %v1558_v54 = vpack.c.bf16 %v1006_v51, %v1004_v50 }
 0x230   : > { %1519 = vmatpush1.bf16.msra.mxu1 %v1518_v56  ;;  %v1008_v56 = vld [vmem:[#allocation8 + $0x1c0] sm:$0xff] }
 0x231   : > { %1521 = vmatprep.subr.bf16.mxu1 %v1520_v57  ;;  %v1010_v57 = vld [vmem:[#allocation8 + $0x1d0] sm:$0xff] }
 0x232   : > { %v1562_v58 = vpack.c.bf16 %v1010_v57, %v1008_v56 }
 0x234   : > { %1523 = vmatpush1.bf16.msra.mxu1 %v1522_v62  ;;  %v1012_v62 = vld [vmem:[#allocation8 + $0x1e0] sm:$0xff] }
 0x235   : > { %1525 = vmatprep.subr.bf16.mxu1 %v1524_v63  ;;  %v1014_v63 = vld [vmem:[#allocation8 + $0x1f0] sm:$0xff] }
 0x236   : > { %v1566_v0 = vpack.c.bf16 %v1014_v63, %v1012_v62 }
 0x238   : > { %1527 = vmatpush1.bf16.msra.mxu1 %v1526_v4 }
 0x239   : > { %1529 = vmatprep.subr.bf16.mxu1 %v1528_v5 }
 0x23c   : > { %1531 = vmatpush1.bf16.msra.mxu1 %v1530_v10 }
 0x23d   : > { %1533 = vmatprep.subr.bf16.mxu1 %v1532_v11 }
 0x240   : > { %1535 = vmatpush1.bf16.msra.mxu1 %v1534_v16  ;;  %v1016_v16 = vld [vmem:[%s2213_s6] sm:$0x3] }
 0x241   : > { %1537 = vmatprep.subr.bf16.mxu1 %v1536_v18  ;;  %v1021_v18 = vrot.slane %v1016_v16, %v2138_v17  ;;  %v1025_v20 = vrot.slane %v1016_v16, %v2143_v19 }
 0x244   : > { %1539 = vmatpush1.bf16.msra.mxu1 %v1538_v24 }
 0x245   : > { %1541 = vmatprep.subr.bf16.mxu1 %v1540_v25 }
 0x248   : > { %1543 = vmatpush1.bf16.msra.mxu1 %v1542_v30 }
 0x249   : > { %1545 = vmatprep.subr.bf16.mxu1 %v1544_v31 }
 0x24c   : > { %1547 = vmatpush1.bf16.msra.mxu1 %v1546_v36 }
 0x24d   : > { %1549 = vmatprep.subr.bf16.mxu1 %v1548_v37 }
 0x250   : > { %1551 = vmatpush1.bf16.msra.mxu1 %v1550_v42 }
 0x251   : > { %1553 = vmatprep.subr.bf16.mxu1 %v1552_v43 }
 0x254   : > { %1555 = vmatpush1.bf16.msra.mxu1 %v1554_v48 }
 0x255   : > { %1557 = vmatprep.subr.bf16.mxu1 %v1556_v49 }
 0x258   : > { %1559 = vmatpush1.bf16.msra.mxu1 %v1558_v54 }
 0x259   : > { %1561 = vmatprep.subr.bf16.mxu1 %v1560_v55 }
 0x25c   : > { %1563 = vmatpush1.bf16.msra.mxu1 %v1562_v58 }
 0x25d   : > { %1565 = vmatprep.subr.bf16.mxu1 %v1564_v61 }
 0x260   : > { %1567 = vmatpush1.bf16.msra.mxu1 %v1566_v0 }
 0x2f6   : > { %v937_v4 = vpop.f32.mrb[0].mxu1 }
 0x2f7   : > { %v938_v5 = vadd.f32 %v937_v4, %v864_v2  ;;  %v939_v6 = vpop.f32.mrb[1].mxu1 }
 0x2f8   : > { %v940_v7 = vadd.f32 %v939_v6, %v868_v3 }
 0x2f9   : > { %v948_v10 = vmax.f32 %v938_v5, 0.0 }
 0x2fa   : > { %v949_v8 = vmax.f32 %v940_v7, 0.0  ;;  %v943_v9 = vpop.f32.mrb[2].mxu1 }
 0x2fb   : > { %v944_v11 = vadd.f32 %v943_v9, %v864_v2  ;;  %v945_v12 = vpop.f32.mrb[3].mxu1 }
 0x2fc   : > { %v946_v13 = vadd.f32 %v945_v12, %v868_v3  ;;  %1092 = vmatprep.mubr.f32.mxu1 %v949_v8 }
 0x2fd   : > { %1093 = vmatmul.mubr.f32.vlgmr.msra.gmra.mrb[4].mxu1 %v948_v10  ;;  %v950_v15 = vmax.f32 %v944_v11, 0.0 }
 0x2fe   : > { %v951_v14 = vmax.f32 %v946_v13, 0.0 }
 0x300   : > { %1098 = vmatprep.mubr.f32.mxu1 %v951_v14 }
 0x301   : > { %1099 = vmatmul.mubr.f32.gmra.mrb[6].mxu1 %v950_v15 }
 0x3d0   : > { %v1094_v21 = vpop.f32.mrb[4].mxu1 }
 0x3d1   : > { %v1095_v22 = vadd.f32 %v1094_v21, %v1021_v18  ;;  %v1096_v23 = vpop.f32.mrb[5].mxu1 }
 0x3d2   : > { %v1097_v24 = vadd.f32 %v1096_v23, %v1025_v20 }
 0x3d3   : > { %1105 = vst [vmem:[%s341_s10] sm:$0xff] %v1095_v22 }
 0x3d4   : > { %1106 = vst [vmem:[%s341_s10 + $0x8] sm:$0xff] %v1097_v24  ;;  %v1100_v25 = vpop.f32.mrb[6].mxu1 }
 0x3d5   : > { %v1101_v17 = vadd.f32 %v1100_v25, %v1021_v18  ;;  %v1102_v26 = vpop.f32.mrb[7].mxu1 }
 0x3d6   : > { %v1103_v19 = vadd.f32 %v1102_v26, %v1025_v20 }
 0x3d7   : > { %1107 = vst [vmem:[%s341_s10 + $0x10] sm:$0xff] %v1101_v17 }
 0x3d8   : > { %1108 = vst [vmem:[%s341_s10 + $0x18] sm:$0xff] %v1103_v19 }
 0x3d9   : > { %1793 = shalt.err (!%p1790_p4)
}
 0x3da   : > { %s1794_s29 = scalar_lea.hbm %s2164_s15, 512  ;;  %s1798_s16 = scalar_lea.hbm %s2214_s7, 1536 }
 0x3db   : > { %p1795_p9 = scmp.ne.s32.totalorder %s2164_s15, %s1794_s29  ;;  %p1799_p8 = scmp.lt.u32.totalorder %s2164_s15, %s2214_s7 }
 0x3dc   : > { %p1800_p12 = scmp.lt.u32.totalorder %s1798_s16, %s1794_s29  ;;  %p1802_p0 = scmp.lt.u32.totalorder %s1794_s29, %s2164_s15 }
 0x3dd   : > { %p1796_p13 = pnand %p1795_p9, %p2060_p5 }
 0x3de   : > { %p1801_p6 = por %p1800_p12, %p1799_p8 }
 0x3df   : > { %p1797_p10 = pneg %p1796_p13 }
 0x3e0   : > { %p1803_p3 = por %p1802_p0, %p1801_p6 }
 0x3e2   : > { %p1804_p7 = pnand %p1803_p3, %p1797_p10 }
 0x3e4   : > { %1807 = shalt.err (!%p1804_p7)
}
 0x3e5   : > { %s1865_s17 = smov 256   ;;  %s1866_s13 = smov 16  }
 0x3e6   : > { %1597 = dma.vmem_to_hbm [thread:$0]  (%p2060_p5), %s2159_s12, 512, %s2164_s15, %s1110_s20, %s1865_s17, %s1865_s17, %s1866_s13  }
 0x3e7 PF: > { %s2234_s28 = sld [smem:[#allocation15_spill]]  ;;  %p1624_p11 = scmp.ge.s32.totalorder %s1854_s27, 2 }
 0x3e8   : > { %s1139_s30 = sand.u32 1, %s1842_s24  }
 0x3e9   : > { %s1140_s9 = scalar_lea.sflag [#allocation4], %s1139_s30 }
 0x3ed   : > { %p2235_p1 = scmp.ne.s32.totalorder %s2234_s28, 0 }
 0x3ef   : > { %p1614_p2 = pnand %p1624_p11, %p2235_p1 }
 0x3f1   : > { %1837 = dma.done.wait (!%p1614_p2), %s1140_s9, 512  }
 0x3f2   : > { %1839 = vsyncadd (!%p1614_p2), %s1140_s9, 4294966784  ;;  %p22_p4 = scmp.ge.s32.totalorder %s2046_s22, 5   ;;  %s2236_s24 = smov %s1846_s25 }
 0x3f3   : > { %s2237_s25 = smov %s1850_s26  ;;  %s2238_s26 = smov %s2056_s18 }
 0x3f4   : > { %s2239_s27 = smov %s2046_s22  ;;  %24 = sbr.rel (!%p22_p4) target bundleno = 7 (0x7), region = 105 }
 0x3fb   :  { %1145 = vsyncpa [#allocation3], 1 }
 0x3fc   :  { %1147 = vsyncpa [#allocation3 + $0x1], 1 }
 0x3fd   :  { %1148 = vsyncpa [#allocation6], 1 }
 0x3fe   :  { %1149 = vsyncpa [#allocation9], 1 }
 0x3ff   :  { %1150 = vsyncpa [#allocation4], 1 }
 0x400   :  { %1152 = vsyncpa [#allocation4 + $0x1], 1 }

</bundles_post_ra>
